<compile_context>
chip_gen: v5e
topology: v5e:2x2
jax: 0.10.0
libtpu: 0.0.40
codegen_flags: <defaults>
</compile_context>

<pallas_src>
import numpy as np

import jax
import jax.numpy as jnp
from jax import lax
from jax.experimental import pallas as pl
from jax.experimental.pallas import tpu as pltpu

# ---------------------------------------------------------------------------
# Scaled-down hyper-parameters (832 -> C_IN, 1024 -> C_OUT, 1000 -> N_CLASSES,
# 14x14 GoogLeNet feature map -> H x W).
# ---------------------------------------------------------------------------
B = 2
C_IN = 8
C_OUT = 16
GROUPS = 2
CG_IN = C_IN // GROUPS           # in-channels per group
CG_OUT = C_OUT // GROUPS         # out-channels per group
K_TAPS = CG_IN * 9               # im2col contraction size per group
H = W = 8
M = H * W                        # flattened spatial size
BM = B * M                       # lane-packed size (= 128, one full lane tile)
N_CLASSES = 10
SP_FACTOR = 2.1
SP_ITERS = 20                    # SoftProposal maxIteration
# TODO(synk): original SoftProposal also has a convergence tolerance / early
# exit; a fixed number of power-iteration steps is used here instead.


def _spatial_gaussian_np(h, w, factor):
    ii, jj = np.meshgrid(np.arange(h), np.arange(w), indexing="ij")
    pos = np.stack([ii.ravel(), jj.ravel()], axis=1).astype(np.float32)   # (M, 2)
    d2 = np.sum((pos[:, None, :] - pos[None, :, :]) ** 2, axis=-1)        # (M, M)
    return np.exp(-d2 / (2.0 * factor * factor)).astype(np.float32)


# Compile-time constants: per-image Gaussian and its block-diagonal (BM, BM)
# form (zero across batch elements), built once with numpy outside jit.
_WD = _spatial_gaussian_np(H, W, SP_FACTOR)                               # (M, M)
_WD_BD = np.kron(np.eye(B, dtype=np.float32), _WD)                       # (BM, BM)


# ---------------------------------------------------------------------------
# Fused kernel: grouped conv + ReLU + SoftProposal + spatial sum + Linear
# ---------------------------------------------------------------------------
def _fused_kernel(p_ref, w_ref, b_ref, wd_ref, fcw_ref, fcb_ref, o_ref):
    # p_ref:   (G*K, B*M)   im2col patches, lane index = b*M + (h*W + w)
    # w_ref:   (C_OUT, G*K) block-diagonal grouped-conv weight
    # b_ref:   (C_OUT, 1)
    # wd_ref:  (B*M, B*M)   block-diagonal spatial Gaussian (0 across batches)
    # fcw_ref: (NC, C_OUT), fcb_ref: (1, NC)
    # o_ref:   (B, NC)
    f32 = jnp.float32

    # ---- grouped 3x3 conv (merged block-diagonal matmul) + bias + ReLU ----
    y = jnp.dot(w_ref[...], p_ref[...], preferred_element_type=f32)
    y = jnp.maximum(y + b_ref[...], 0.0)                       # (C_OUT, BM)

    # ---- SoftProposal: both batch elements lane-packed (128-wide chain) ----
    # Pairwise feature distances via the gram identity.  Channel axis is
    # contracted directly on the MXU (transposed-LHS is free): no y^T copy.
    gram = lax.dot_general(y, y, (((0,), (0,)), ((), ())),
                           preferred_element_type=f32)          # (BM, BM)
    y2 = y * y
    sq_row = jnp.sum(y2, axis=0, keepdims=True)                 # (1, BM)
    ones_c = jnp.ones((C_OUT, 1), f32)
    sq_col = lax.dot_general(y2, ones_c, (((0,), (0,)), ((), ())),
                             preferred_element_type=f32)        # (BM, 1)
    dist = jnp.sqrt(jnp.maximum(sq_col + sq_row - 2.0 * gram, 0.0))

    # Transfer matrix: feature distance * spatial Gaussian; the block-diagonal
    # Gaussian exactly zeroes every cross-batch entry, so all later matmuls
    # stay block-diagonal.  Column-normalize (column-stochastic).
    trans = dist * wd_ref[...]
    colsum = jnp.sum(trans, axis=0, keepdims=True)              # (1, BM)
    trans = trans * pl.reciprocal(colsum + 1e-12, approx=True)

    # trans^SP_ITERS via exponentiation by squaring (5 MXU matmuls for 20),
    # then one application to the per-batch uniform start vector.  Equivalent
    # to 20 renormalized matvecs since trans is column-stochastic.
    t_pow = None
    base = trans
    e = SP_ITERS
    while e > 0:
        if e & 1:
            t_pow = base if t_pow is None else jnp.dot(
                t_pow, base, preferred_element_type=f32)
        e >>= 1
        if e:
            base = jnp.dot(base, base, preferred_element_type=f32)

    p = jnp.sum(t_pow, axis=1, keepdims=True) * (1.0 / M)       # (BM, 1)

    # ---- coupling + SpatialSumOverMap + classifier epilogue ----
    # feat_b = (Y_b @ p_b) / sum(p_b): two tiny matvecs; the per-batch scalar
    # normalizer folds into the feature vector (EUP reciprocal).
    feats_cols = []
    for bi in range(B):
        yb = y[:, bi * M:(bi + 1) * M]                          # (C_OUT, M)
        pb = p[bi * M:(bi + 1) * M, :]                          # (M, 1)
        fb = jnp.dot(yb, pb, preferred_element_type=f32)        # (C_OUT, 1)
        inv = pl.reciprocal(jnp.sum(pb, keepdims=True) + 1e-12, approx=True)
        feats_cols.append(fb * inv)
    feats_t = jnp.concatenate(feats_cols, axis=1)               # (C_OUT, B)

    logits_t = jnp.dot(fcw_ref[...], feats_t,
                       preferred_element_type=f32)              # (NC, B)
    o_ref[...] = logits_t.T + fcb_ref[...]                      # (B, NC)


# ---------------------------------------------------------------------------
# Wrapper: im2col glue + block-diagonal weight + single pallas_call
# ---------------------------------------------------------------------------
def _im2col_grouped(x):
    # TODO(synk): at real SP_GoogLeNet scale (C_IN=832, 14x14) move im2col
    # in-kernel (accumulate 9 shifted matmuls, weights resident, K tiled with
    # pl.Buffered) instead of materializing patches in HBM; at toy scale the
    # jit-fused wrapper version is kept for layout robustness.
    Bn, C, Hn, Wn = x.shape
    Cg = C // GROUPS
    xpad = jnp.pad(x, ((0, 0), (0, 0), (1, 1), (1, 1)))
    xg = xpad.reshape(Bn, GROUPS, Cg, Hn + 2, Wn + 2)
    taps = [xg[:, :, :, kh:kh + Hn, kw:kw + Wn] for kh in range(3) for kw in range(3)]
    pat = jnp.stack(taps, axis=3)                               # (B, G, Cg, 9, H, W)
    pat = pat.reshape(Bn, GROUPS, Cg * 9, Hn * Wn)              # (B, G, K, M)
    pat = jnp.transpose(pat, (1, 2, 0, 3))                      # (G, K, B, M)
    return pat.reshape(GROUPS * Cg * 9, Bn * Hn * Wn)           # (G*K, B*M)


def _block_diag_weight(w):
    # (C_OUT, CG_IN, 3, 3) grouped weight -> (C_OUT, GROUPS*K_TAPS) block-diag
    w_g = w.reshape(GROUPS, CG_OUT, K_TAPS)
    rows = []
    for g in range(GROUPS):
        blocks = [w_g[g] if j == g else jnp.zeros((CG_OUT, K_TAPS), w.dtype)
                  for j in range(GROUPS)]
        rows.append(jnp.concatenate(blocks, axis=1))
    return jnp.concatenate(rows, axis=0)


@jax.jit
def sp_googlenet_forward(x, params):
    # TODO(synk): the legacy Lua GoogLeNet feature extractor (`self.features`,
    # load_lua('SP_GoogleNet_ImageNet.pt')) cannot be reproduced; the kernel
    # consumes the (832-channel-equivalent) feature map directly.
    patches = _im2col_grouped(x)                                # (G*K, B*M)
    w_bd = _block_diag_weight(params["adconv_w"])               # (C_OUT, G*K)
    b_col = params["adconv_b"].reshape(C_OUT, 1)
    fc_b = params["fc_b"].reshape(1, N_CLASSES)
    wd_bd = jnp.asarray(_WD_BD)                                 # compile-time const

    return pl.pallas_call(
        _fused_kernel,
        out_shape=jax.ShapeDtypeStruct((B, N_CLASSES), jnp.float32),
        grid_spec=pltpu.PrefetchScalarGridSpec(
            num_scalar_prefetch=0,
            grid=(1,),
            in_specs=[
                pl.BlockSpec((GROUPS * K_TAPS, BM), lambda i: (0, 0)),
                pl.BlockSpec((C_OUT, GROUPS * K_TAPS), lambda i: (0, 0)),
                pl.BlockSpec((C_OUT, 1), lambda i: (0, 0)),
                pl.BlockSpec((BM, BM), lambda i: (0, 0)),
                pl.BlockSpec((N_CLASSES, C_OUT), lambda i: (0, 0)),
                pl.BlockSpec((1, N_CLASSES), lambda i: (0, 0)),
            ],
            out_specs=pl.BlockSpec((B, N_CLASSES), lambda i: (0, 0)),
        ),
        compiler_params=pltpu.CompilerParams(
            dimension_semantics=("arbitrary",),
        ),
    )(patches, w_bd, b_col, wd_bd, params["fc_w"], fc_b)


# ---------------------------------------------------------------------------
# Pure-JAX reference (original iterative power-iteration semantics)
# ---------------------------------------------------------------------------
def reference_forward(x, params):
    out = lax.conv_general_dilated(
        x, params["adconv_w"], window_strides=(1, 1), padding=((1, 1), (1, 1)),
        dimension_numbers=("NCHW", "OIHW", "NCHW"), feature_group_count=GROUPS,
    )
    out = jnp.maximum(out + params["adconv_b"][None, :, None, None], 0.0)
    y = out.reshape(B, C_OUT, M)
    wd = jnp.asarray(_WD)
    feats = []
    for b in range(B):
        yb = y[b]
        gram = yb.T @ yb
        sq = jnp.sum(yb * yb, axis=0)
        dist = jnp.sqrt(jnp.maximum(sq[:, None] + sq[None, :] - 2.0 * gram, 0.0))
        trans = dist * wd
        trans = trans / (jnp.sum(trans, axis=0, keepdims=True) + 1e-12)
        p = jnp.full((M,), 1.0 / M, dtype=jnp.float32)
        for _ in range(SP_ITERS):
            p = trans @ p
            p = p / (jnp.sum(p) + 1e-12)
        feats.append(yb @ p)
    feats = jnp.stack(feats)
    return feats @ params["fc_w"].T + params["fc_b"][None, :]


if __name__ == "__main__":
    key = jax.random.PRNGKey(0)
    k1, k2, k3, k4, k5 = jax.random.split(key, 5)
    x = jax.random.normal(k1, (B, C_IN, H, W), jnp.float32)
    params = {
        "adconv_w": 0.1 * jax.random.normal(k2, (C_OUT, CG_IN, 3, 3), jnp.float32),
        "adconv_b": 0.1 * jax.random.normal(k3, (C_OUT,), jnp.float32),
        "fc_w": 0.1 * jax.random.normal(k4, (N_CLASSES, C_OUT), jnp.float32),
        "fc_b": 0.1 * jax.random.normal(k5, (N_CLASSES,), jnp.float32),
    }

    logits = jax.block_until_ready(sp_googlenet_forward(x, params))
    assert logits.shape == (B, N_CLASSES)

    ref = reference_forward(x, params)
    # Tolerance slightly loosened vs. exact math: approx EUP reciprocals are
    # used in the (column/sum) normalizations of the power-iteration chain.
    assert jnp.allclose(logits, ref, rtol=2e-3, atol=2e-3), (logits, ref)

    print("KERNEL_OK")
</pallas_src>

<mosaic_0001>
module attributes {stable_mosaic.version = 11 : i64} {
  func.func @_fused_kernel(%arg0: i32, %arg1: memref<72x128xf32, #tpu.memory_space<vmem>>, %arg2: memref<16x72xf32, #tpu.memory_space<vmem>>, %arg3: memref<16x1xf32, #tpu.memory_space<vmem>>, %arg4: memref<128x128xf32, #tpu.memory_space<vmem>>, %arg5: memref<10x16xf32, #tpu.memory_space<vmem>>, %arg6: memref<1x10xf32, #tpu.memory_space<vmem>>, %arg7: memref<2x10xf32, #tpu.memory_space<vmem>>) attributes {dimension_semantics = [#tpu.dimension_semantics<arbitrary>], iteration_bounds = array<i64: 1>, scalar_prefetch = 0 : i64, scratch_operands = 0 : i64, tpu.core_type = #tpu.core_type<tc>, window_params = [{pipeline_mode = #tpu.pipeline_mode<synchronous>, transform_indices = @transform_0, window_bounds = array<i64: 72, 128>}, {pipeline_mode = #tpu.pipeline_mode<synchronous>, transform_indices = @transform_1, window_bounds = array<i64: 16, 72>}, {pipeline_mode = #tpu.pipeline_mode<synchronous>, transform_indices = @transform_2, window_bounds = array<i64: 16, 1>}, {pipeline_mode = #tpu.pipeline_mode<synchronous>, transform_indices = @transform_3, window_bounds = array<i64: 128, 128>}, {pipeline_mode = #tpu.pipeline_mode<synchronous>, transform_indices = @transform_4, window_bounds = array<i64: 10, 16>}, {pipeline_mode = #tpu.pipeline_mode<synchronous>, transform_indices = @transform_5, window_bounds = array<i64: 1, 10>}, {pipeline_mode = #tpu.pipeline_mode<synchronous>, transform_indices = @transform_6, window_bounds = array<i64: 2, 10>}]} {
    %c0 = arith.constant 0 : index
    %c0_0 = arith.constant 0 : index
    %0 = vector.load %arg2[%c0, %c0_0] : memref<16x72xf32, #tpu.memory_space<vmem>>, vector<16x72xf32>
    %c0_1 = arith.constant 0 : index
    %c0_2 = arith.constant 0 : index
    %1 = vector.load %arg1[%c0_1, %c0_2] : memref<72x128xf32, #tpu.memory_space<vmem>>, vector<72x128xf32>
    %cst = arith.constant dense<0.000000e+00> : vector<16x128xf32>
    %2 = tpu.matmul %0, %1, %cst {dimension_numbers = #tpu.dot_dimension_numbers<[1], [0], [0], [1], [0, 0, 1, 1], [], []>} : vector<16x72xf32>, vector<72x128xf32>, vector<16x128xf32> -> vector<16x128xf32>
    %c0_3 = arith.constant 0 : index
    %c0_4 = arith.constant 0 : index
    %3 = vector.load %arg3[%c0_3, %c0_4] : memref<16x1xf32, #tpu.memory_space<vmem>>, vector<16x1xf32>
    %4 = vector.broadcast %3 : vector<16x1xf32> to vector<16x128xf32>
    %5 = arith.addf %2, %4 : vector<16x128xf32>
    %cst_5 = arith.constant 0.000000e+00 : f32
    %6 = vector.broadcast %cst_5 : f32 to vector<16x128xf32>
    %7 = arith.maximumf %5, %6 : vector<16x128xf32>
    %cst_6 = arith.constant dense<0.000000e+00> : vector<128x128xf32>
    %8 = tpu.matmul %7, %7, %cst_6 {dimension_numbers = #tpu.dot_dimension_numbers<[0], [0], [1], [1], [0, 1, 1, 1], [], []>} : vector<16x128xf32>, vector<16x128xf32>, vector<128x128xf32> -> vector<128x128xf32>
    %9 = arith.mulf %7, %7 : vector<16x128xf32>
    %cst_7 = arith.constant dense<0.000000e+00> : vector<128xf32>
    %10 = vector.multi_reduction <add>, %9, %cst_7 [0] : vector<16x128xf32> to vector<128xf32>
    %11 = vector.shape_cast %10 : vector<128xf32> to vector<1x128xf32>
    %cst_8 = arith.constant 1.000000e+00 : f32
    %12 = vector.broadcast %cst_8 : f32 to vector<16x1xf32>
    %cst_9 = arith.constant dense<0.000000e+00> : vector<128x1xf32>
    %13 = tpu.matmul %9, %12, %cst_9 {dimension_numbers = #tpu.dot_dimension_numbers<[0], [0], [1], [1], [0, 1, 1, 1], [], []>} : vector<16x128xf32>, vector<16x1xf32>, vector<128x1xf32> -> vector<128x1xf32>
    %14 = vector.broadcast %13 : vector<128x1xf32> to vector<128x128xf32>
    %15 = vector.broadcast %11 : vector<1x128xf32> to vector<128x128xf32>
    %16 = arith.addf %14, %15 : vector<128x128xf32>
    %cst_10 = arith.constant 2.000000e+00 : f32
    %17 = vector.broadcast %cst_10 : f32 to vector<128x128xf32>
    %18 = arith.mulf %17, %8 : vector<128x128xf32>
    %19 = arith.subf %16, %18 : vector<128x128xf32>
    %cst_11 = arith.constant 0.000000e+00 : f32
    %20 = vector.broadcast %cst_11 : f32 to vector<128x128xf32>
    %21 = arith.maximumf %19, %20 : vector<128x128xf32>
    %22 = math.sqrt %21 : vector<128x128xf32>
    %c0_12 = arith.constant 0 : index
    %c0_13 = arith.constant 0 : index
    %23 = vector.load %arg4[%c0_12, %c0_13] : memref<128x128xf32, #tpu.memory_space<vmem>>, vector<128x128xf32>
    %24 = arith.mulf %22, %23 : vector<128x128xf32>
    %cst_14 = arith.constant dense<0.000000e+00> : vector<128xf32>
    %25 = vector.multi_reduction <add>, %24, %cst_14 [0] : vector<128x128xf32> to vector<128xf32>
    %26 = vector.shape_cast %25 : vector<128xf32> to vector<1x128xf32>
    %cst_15 = arith.constant 9.99999996E-13 : f32
    %27 = vector.broadcast %cst_15 : f32 to vector<1x128xf32>
    %28 = arith.addf %26, %27 : vector<1x128xf32>
    %29 = tpu.reciprocal %28 {approx = true} : vector<1x128xf32> -> vector<1x128xf32>
    %30 = vector.broadcast %29 : vector<1x128xf32> to vector<128x128xf32>
    %31 = arith.mulf %24, %30 : vector<128x128xf32>
    %cst_16 = arith.constant dense<0.000000e+00> : vector<128x128xf32>
    %32 = tpu.matmul %31, %31, %cst_16 {dimension_numbers = #tpu.dot_dimension_numbers<[1], [0], [0], [1], [0, 0, 1, 1], [], []>} : vector<128x128xf32>, vector<128x128xf32>, vector<128x128xf32> -> vector<128x128xf32>
    %cst_17 = arith.constant dense<0.000000e+00> : vector<128x128xf32>
    %33 = tpu.matmul %32, %32, %cst_17 {dimension_numbers = #tpu.dot_dimension_numbers<[1], [0], [0], [1], [0, 0, 1, 1], [], []>} : vector<128x128xf32>, vector<128x128xf32>, vector<128x128xf32> -> vector<128x128xf32>
    %cst_18 = arith.constant dense<0.000000e+00> : vector<128x128xf32>
    %34 = tpu.matmul %33, %33, %cst_18 {dimension_numbers = #tpu.dot_dimension_numbers<[1], [0], [0], [1], [0, 0, 1, 1], [], []>} : vector<128x128xf32>, vector<128x128xf32>, vector<128x128xf32> -> vector<128x128xf32>
    %cst_19 = arith.constant dense<0.000000e+00> : vector<128x128xf32>
    %35 = tpu.matmul %34, %34, %cst_19 {dimension_numbers = #tpu.dot_dimension_numbers<[1], [0], [0], [1], [0, 0, 1, 1], [], []>} : vector<128x128xf32>, vector<128x128xf32>, vector<128x128xf32> -> vector<128x128xf32>
    %cst_20 = arith.constant dense<0.000000e+00> : vector<128x128xf32>
    %36 = tpu.matmul %33, %35, %cst_20 {dimension_numbers = #tpu.dot_dimension_numbers<[1], [0], [0], [1], [0, 0, 1, 1], [], []>} : vector<128x128xf32>, vector<128x128xf32>, vector<128x128xf32> -> vector<128x128xf32>
    %cst_21 = arith.constant dense<0.000000e+00> : vector<128xf32>
    %37 = vector.multi_reduction <add>, %36, %cst_21 [1] : vector<128x128xf32> to vector<128xf32>
    %38 = vector.shape_cast %37 : vector<128xf32> to vector<128x1xf32>
    %cst_22 = arith.constant 1.562500e-02 : f32
    %39 = vector.broadcast %cst_22 : f32 to vector<128x1xf32>
    %40 = arith.mulf %38, %39 : vector<128x1xf32>
    %41 = vector.extract_strided_slice %7 {offsets = [0, 0], sizes = [16, 64], strides = [1, 1]} : vector<16x128xf32> to vector<16x64xf32>
    %42 = vector.extract_strided_slice %40 {offsets = [0, 0], sizes = [64, 1], strides = [1, 1]} : vector<128x1xf32> to vector<64x1xf32>
    %cst_23 = arith.constant dense<0.000000e+00> : vector<16x1xf32>
    %43 = tpu.matmul %41, %42, %cst_23 {dimension_numbers = #tpu.dot_dimension_numbers<[1], [0], [0], [1], [0, 0, 1, 1], [], []>} : vector<16x64xf32>, vector<64x1xf32>, vector<16x1xf32> -> vector<16x1xf32>
    %44 = vector.shape_cast %42 : vector<64x1xf32> to vector<1x64x1xf32>
    %cst_24 = arith.constant dense<0.000000e+00> : vector<1xf32>
    %45 = vector.multi_reduction <add>, %44, %cst_24 [1, 2] : vector<1x64x1xf32> to vector<1xf32>
    %46 = vector.shape_cast %45 : vector<1xf32> to vector<1x1x1xf32>
    %47 = vector.extract %46[0, 0, 0] : f32 from vector<1x1x1xf32>
    %48 = vector.broadcast %47 : f32 to vector<1x1xf32>
    %cst_25 = arith.constant 9.99999996E-13 : f32
    %49 = vector.broadcast %cst_25 : f32 to vector<1x1xf32>
    %50 = arith.addf %48, %49 : vector<1x1xf32>
    %51 = tpu.reciprocal %50 {approx = true} : vector<1x1xf32> -> vector<1x1xf32>
    %52 = vector.broadcast %51 : vector<1x1xf32> to vector<16x1xf32>
    %53 = arith.mulf %43, %52 : vector<16x1xf32>
    %54 = vector.extract_strided_slice %7 {offsets = [0, 64], sizes = [16, 64], strides = [1, 1]} : vector<16x128xf32> to vector<16x64xf32>
    %55 = vector.extract_strided_slice %40 {offsets = [64, 0], sizes = [64, 1], strides = [1, 1]} : vector<128x1xf32> to vector<64x1xf32>
    %cst_26 = arith.constant dense<0.000000e+00> : vector<16x1xf32>
    %56 = tpu.matmul %54, %55, %cst_26 {dimension_numbers = #tpu.dot_dimension_numbers<[1], [0], [0], [1], [0, 0, 1, 1], [], []>} : vector<16x64xf32>, vector<64x1xf32>, vector<16x1xf32> -> vector<16x1xf32>
    %57 = vector.shape_cast %55 : vector<64x1xf32> to vector<1x64x1xf32>
    %cst_27 = arith.constant dense<0.000000e+00> : vector<1xf32>
    %58 = vector.multi_reduction <add>, %57, %cst_27 [1, 2] : vector<1x64x1xf32> to vector<1xf32>
    %59 = vector.shape_cast %58 : vector<1xf32> to vector<1x1x1xf32>
    %60 = vector.extract %59[0, 0, 0] : f32 from vector<1x1x1xf32>
    %61 = vector.broadcast %60 : f32 to vector<1x1xf32>
    %cst_28 = arith.constant 9.99999996E-13 : f32
    %62 = vector.broadcast %cst_28 : f32 to vector<1x1xf32>
    %63 = arith.addf %61, %62 : vector<1x1xf32>
    %64 = tpu.reciprocal %63 {approx = true} : vector<1x1xf32> -> vector<1x1xf32>
    %65 = vector.broadcast %64 : vector<1x1xf32> to vector<16x1xf32>
    %66 = arith.mulf %56, %65 : vector<16x1xf32>
    %67 = tpu.concatenate %53, %66 in 1 : vector<16x1xf32>, vector<16x1xf32> -> vector<16x2xf32>
    %c0_29 = arith.constant 0 : index
    %c0_30 = arith.constant 0 : index
    %68 = vector.load %arg5[%c0_29, %c0_30] : memref<10x16xf32, #tpu.memory_space<vmem>>, vector<10x16xf32>
    %cst_31 = arith.constant dense<0.000000e+00> : vector<10x2xf32>
    %69 = tpu.matmul %68, %67, %cst_31 {dimension_numbers = #tpu.dot_dimension_numbers<[1], [0], [0], [1], [0, 0, 1, 1], [], []>} : vector<10x16xf32>, vector<16x2xf32>, vector<10x2xf32> -> vector<10x2xf32>
    %70 = tpu.transpose %69, [1, 0] : vector<10x2xf32> -> vector<2x10xf32>
    %c0_32 = arith.constant 0 : index
    %c0_33 = arith.constant 0 : index
    %71 = vector.load %arg6[%c0_32, %c0_33] : memref<1x10xf32, #tpu.memory_space<vmem>>, vector<1x10xf32>
    %72 = vector.broadcast %71 : vector<1x10xf32> to vector<2x10xf32>
    %73 = arith.addf %70, %72 : vector<2x10xf32>
    %c0_34 = arith.constant 0 : index
    %c0_35 = arith.constant 0 : index
    %74 = vector.load %arg7[%c0_34, %c0_35] : memref<2x10xf32, #tpu.memory_space<vmem>>, vector<2x10xf32>
    tpu.vector_store %arg7[%c0_34, %c0_35], %73 {strides = array<i32>} : memref<2x10xf32, #tpu.memory_space<vmem>>, vector<2x10xf32>,
    return
  }
  func.func @transform_0(%arg0: i32) -> (i32, i32) {
    %c0_i32 = arith.constant 0 : i32
    %c0_i32_0 = arith.constant 0 : i32
    %c0_i32_1 = arith.constant 0 : i32
    return %c0_i32, %c0_i32_0 : i32, i32
  }
  func.func @transform_1(%arg0: i32) -> (i32, i32) {
    %c0_i32 = arith.constant 0 : i32
    %c0_i32_0 = arith.constant 0 : i32
    %c0_i32_1 = arith.constant 0 : i32
    return %c0_i32, %c0_i32_0 : i32, i32
  }
  func.func @transform_2(%arg0: i32) -> (i32, i32) {
    %c0_i32 = arith.constant 0 : i32
    %c0_i32_0 = arith.constant 0 : i32
    %c0_i32_1 = arith.constant 0 : i32
    return %c0_i32, %c0_i32_0 : i32, i32
  }
  func.func @transform_3(%arg0: i32) -> (i32, i32) {
    %c0_i32 = arith.constant 0 : i32
    %c0_i32_0 = arith.constant 0 : i32
    %c0_i32_1 = arith.constant 0 : i32
    return %c0_i32, %c0_i32_0 : i32, i32
  }
  func.func @transform_4(%arg0: i32) -> (i32, i32) {
    %c0_i32 = arith.constant 0 : i32
    %c0_i32_0 = arith.constant 0 : i32
    %c0_i32_1 = arith.constant 0 : i32
    return %c0_i32, %c0_i32_0 : i32, i32
  }
  func.func @transform_5(%arg0: i32) -> (i32, i32) {
    %c0_i32 = arith.constant 0 : i32
    %c0_i32_0 = arith.constant 0 : i32
    %c0_i32_1 = arith.constant 0 : i32
    return %c0_i32, %c0_i32_0 : i32, i32
  }
  func.func @transform_6(%arg0: i32) -> (i32, i32) {
    %c0_i32 = arith.constant 0 : i32
    %c0_i32_0 = arith.constant 0 : i32
    %c0_i32_1 = arith.constant 0 : i32
    return %c0_i32, %c0_i32_0 : i32, i32
  }
}

</mosaic_0001>

<bundles_post_ra>
// kernel: squeeze.2
= control target key start
LH: loop header
LB: loop body
LE: loop exit
PB: predicated region body
PF: predicated region fallthrough
CT: control target
= control target key end

     0   :  { %vm51_vm0 = vcmask 64512   ;;  %s224_s0 = inlined_call_operand.vmem [shape: f32[8,4,3,3], index: 0, kind: input, shape index: {}]   ;;  %s225_s1 = inlined_call_operand.vmem [shape: f32[8,36], index: 1, kind: output, shape index: {}]  }
   0x1   :  { %v108_v0 = vld [vmem:[%s224_s0 + $0x2c] sm:$0xf]  ;;  %v109_v1 = vld [vmem:[%s224_s0 + $0x28] sm:$0xf]  ;;  %v110_v2 = vld [vmem:[%s224_s0 + $0x24] sm:$0xf] }
   0x2   :  { %7 = vst [vmem:[#allocation0 + $0x28] sm:$0xf] %v108_v0  ;;  %v111_v3 = vld [vmem:[%s224_s0 + $0x20] sm:$0xf]  ;;  %v112_v4 = vld [vmem:[%s224_s0 + $0x1c] sm:$0xf] }
   0x3   :  { %11 = vst [vmem:[#allocation0 + $0x58] sm:$0xf] %v109_v1  ;;  %v113_v5 = vld [vmem:[%s224_s0 + $0x18] sm:$0xf]  ;;  %v114_v6 = vld [vmem:[%s224_s0 + $0x14] sm:$0xf] }
   0x4   :  { %15 = vst [vmem:[#allocation0] sm:$0xf] %v110_v2  ;;  %v115_v7 = vld [vmem:[%s224_s0 + $0x10] sm:$0xf]  ;;  %v116_v8 = vld [vmem:[%s224_s0 + $0xc] sm:$0xf] }
   0x5   :  { %19 = vst [vmem:[#allocation0 + $0x40] sm:$0xf] %v111_v3  ;;  %v117_v9 = vld [vmem:[%s224_s0 + $0x8] sm:$0xf]  ;;  %v118_v10 = vld [vmem:[%s224_s0 + $0x4] sm:$0xf] }
   0x6   :  { %23 = vst [vmem:[#allocation0 + $0x8] sm:$0xf] %v112_v4  ;;  %v48_v11 = vld [vmem:[%s224_s0] sm:$0xf] }
   0x7   :  { %27 = vst [vmem:[#allocation0 + $0x38] sm:$0xf] %v113_v5 }
   0x8   :  { %31 = vst [vmem:[#allocation0 + $0x50] sm:$0xf] %v114_v6 }
   0x9   :  { %35 = vst [vmem:[#allocation0 + $0x20] sm:$0xf] %v115_v7  ;;  %v104_v23 = vld [vmem:[#allocation0 + $0x28] sm:$0x7]  }
   0xa   :  { %39 = vst [vmem:[#allocation0 + $0x30] sm:$0xf] %v116_v8  ;;  %v99_v22 = vld [vmem:[#allocation0 + $0x58] sm:$0x7]  }
   0xb   :  { %43 = vst [vmem:[#allocation0 + $0x10] sm:$0xf] %v117_v9  ;;  %v94_v21 = vld [vmem:[#allocation0] sm:$0x7]  }
   0xc   :  { %47 = vst [vmem:[#allocation0 + $0x48] sm:$0xf] %v118_v10  ;;  %v89_v19 = vld [vmem:[#allocation0 + $0x40] sm:$0x7]  }
   0xd   :  { %49 = vst [vmem:[#allocation0 + $0x18] sm:$0xf] %v48_v11  ;;  %v84_v12 = vld [vmem:[#allocation0 + $0x8] sm:$0x7]  }
   0xe   :  { %v79_v13 = vld [vmem:[#allocation0 + $0x38] sm:$0x7]   ;;  %125 = vst.msk [vmem:[%s225_s1 + $0x15] sm:$0x7] %vm51_vm0, %v84_v12  }
   0xf   :  { %v74_v14 = vld [vmem:[#allocation0 + $0x50] sm:$0x7]   ;;  %124 = vst.msk [vmem:[%s225_s1 + $0x12] sm:$0x7] %vm51_vm0, %v79_v13  }
  0x10   :  { %v69_v15 = vld [vmem:[#allocation0 + $0x20] sm:$0x7]   ;;  %123 = vst.msk [vmem:[%s225_s1 + $0xf] sm:$0x7] %vm51_vm0, %v74_v14  }
  0x11   :  { %v64_v16 = vld [vmem:[#allocation0 + $0x30] sm:$0x7]   ;;  %122 = vst.msk [vmem:[%s225_s1 + $0xc] sm:$0x7] %vm51_vm0, %v69_v15  }
  0x12   :  { %v59_v17 = vld [vmem:[#allocation0 + $0x10] sm:$0x7]   ;;  %121 = vst.msk [vmem:[%s225_s1 + $0x9] sm:$0x7] %vm51_vm0, %v64_v16  }
  0x13   :  { %v54_v18 = vld [vmem:[#allocation0 + $0x48] sm:$0x7]   ;;  %120 = vst.msk [vmem:[%s225_s1 + $0x6] sm:$0x7] %vm51_vm0, %v59_v17  }
  0x14   :  { %v50_v20 = vld [vmem:[#allocation0 + $0x18] sm:$0x7]   ;;  %119 = vst.msk [vmem:[%s225_s1 + $0x3] sm:$0x7] %vm51_vm0, %v54_v18  }
  0x15   :  { %52 = vst.msk [vmem:[%s225_s1] sm:$0x7] %vm51_vm0, %v50_v20  }
  0x16   :  { %126 = vst.msk [vmem:[%s225_s1 + $0x18] sm:$0x7] %vm51_vm0, %v89_v19  }
  0x17   :  { %127 = vst.msk [vmem:[%s225_s1 + $0x1b] sm:$0x7] %vm51_vm0, %v94_v21  }
  0x18   :  { %128 = vst.msk [vmem:[%s225_s1 + $0x1e] sm:$0x7] %vm51_vm0, %v99_v22  }
  0x19   :  { %129 = vst.msk [vmem:[%s225_s1 + $0x21] sm:$0x7] %vm51_vm0, %v104_v23  }

// kernel: sp_googlenet_forward.1
= control target key start
LH: loop header
LB: loop body
LE: loop exit
PB: predicated region body
PF: predicated region fallthrough
CT: control target
= control target key end

     0   :  { %v1514_v2 = vmov 0   ;;  %s2067_s0 = inlined_call_operand.vmem [shape: f32[72,128], index: 0, kind: input, shape index: {}]   ;;  %s2068_s1 = inlined_call_operand.vmem [shape: f32[16,72], index: 1, kind: input, shape index: {}]   ;;  %s2069_s2 = inlined_call_operand.vmem [shape: f32[16,1], index: 2, kind: input, shape index: {}]   ;;  %s2070_s3 = inlined_call_operand.vmem [shape: f32[128,128], index: 3, kind: input, shape index: {}]   ;;  %s2071_s4 = inlined_call_operand.vmem [shape: f32[10,16], index: 4, kind: input, shape index: {}]   ;;  %s2072_s5 = inlined_call_operand.vmem [shape: f32[1,10], index: 5, kind: input, shape index: {}]   ;;  %s2073_s6 = inlined_call_operand.hbm [shape: f32[2,10], index: 6, kind: output, shape index: {}]  }
   0x1   :  { %v34_v0 = vld [vmem:[%s2067_s0 + $0x40] sm:$0xff]  ;;  %v33_v1 = vld [vmem:[%s2067_s0 + $0x38] sm:$0xff]  ;;  %1441 = vset.pattern.permute.xlu0 %v1514_v2  ;;  %v32_v3 = vld [vmem:[%s2067_s0 + $0x30] sm:$0xff] }
   0x2   :  { %61 = vmatpush.msra.mxu0 %v34_v0  ;;  %v35_v4 = vld [vmem:[%s2069_s2] sm:$0xff]  ;;  %v31_v5 = vld [vmem:[%s2067_s0 + $0x28] sm:$0xff] }
   0x3   :  { %39 = vperm.xlu0 %1441, %v35_v4  }
   0x4   :  { %62 = vmatpush.msra.mxu0 %v33_v1 }
   0x5   :  { %11 = vsyncpa [#allocation3], 0  ;;  %v30_v6 = vld [vmem:[%s2067_s0 + $0x20] sm:$0xff]  ;;  %v29_v7 = vld [vmem:[%s2067_s0 + $0x18] sm:$0xff]  ;;  %vm47_vm0 = vcmask 588800   ;;  %v1515_v14 = vmov 1.0  }
   0x6   :  { %63 = vmatpush.msra.mxu0 %v32_v3  ;;  %v36_v8 = vld [vmem:[%s2069_s2 + $0x8] sm:$0xff]  ;;  %v28_v9 = vld [vmem:[%s2067_s0 + $0x10] sm:$0xff]  ;;  %v26_v11 = vld [vmem:[%s2067_s0] sm:$0xff]  ;;  %328 = vmatpush.msra.mxu2 %v1515_v14  ;;  %vm111_vm1 = vcmask 130048   ;;  %s1517_s27 = smov 1   ;;  %s1518_s10 = smov [#allocation2]  }
   0x7   :  { %v27_v10 = vld [vmem:[%s2067_s0 + $0x8] sm:$0xff]  ;;  %v24_v12 = vld [vmem:[%s2068_s1] sm:$0xff]  ;;  %s1364_s11 = sshll.u32 %s1518_s10, 4  ;;  %s1366_s14 = sshll.u32 %s2073_s6, 4  ;;  %s1365_s11 = int_to_ptr.vmem [resolvable:$true] %s1364_s11  ;;  %s1367_s14 = int_to_ptr.hbm [resolvable:$true] %s1366_s14 }
   0x8   :  { %64 = vmatpush.msra.mxu0 %v31_v5  ;;  %v25_v13 = vld [vmem:[%s2068_s1 + $0x8] sm:$0xff]  ;;  %329 = vmatpush.msra.mxu2 %v1515_v14 }
   0xa   :  { %65 = vmatpush.msra.mxu0 %v30_v6 }
   0xb   :  { %44 = vperm.xlu0 %1441, %v36_v8  }
   0xc   :  { %66 = vmatpush.msra.mxu0 %v29_v7 }
   0xe   :  { %67 = vmatpush.msra.mxu0 %v28_v9 }
  0x10   :  { %68 = vmatpush.msra.mxu0 %v27_v10 }
  0x12   :  { %69 = vmatpush.msra.mxu0 %v26_v11 }
  0x13   :  { %1375 = vmatmul.msk.f32.vlgmr.msra.gmra.mxu0 %vm47_vm0, %v24_v12 }
  0x1b   :  { %1376 = vmatmul.msk.f32.gmra.mxu0 %vm47_vm0, %v25_v13 }
  0x75   :  { %v40_v15 = vpop.permute.xlu0 %39 }
  0x7d   :  { %v45_v20 = vpop.permute.xlu0 %44 }
  0x90   :  { %v71_v16 = vpop.f32.mrf.mxu0 }
  0x91   :  { %v72_v17 = vadd.f32 %v71_v16, %v40_v15 }
  0x93   :  { %v1593_v18 = vmax.f32 %v72_v17, 0.0 }
  0x95   :  { %79 = vxpose.xlu2.b32.start [1/2] (short) %v1593_v18, 128  ;;  %v225_v19 = vmul.f32 %v1593_v18, %v1593_v18 }
  0x97   :  { %234 = vxpose.xlu1.b32.start [1/2] (short) %v225_v19, 128 }
  0x98   :  { %v74_v21 = vpop.f32.mrf.mxu0 }
  0x99   :  { %v75_v22 = vadd.f32 %v74_v21, %v45_v20 }
  0x9b   :  { %v1598_v23 = vmax.f32 %v75_v22, 0.0 }
  0x9d   :  { %v226_v24 = vmul.f32 %v1598_v23, %v1598_v23  ;;  %174 = vmatpush.msra.mxu1 %v1598_v23  ;;  %80 = vxpose.xlu2.b32.end [2/2] (short) %v1598_v23, 128 }
  0x9f   :  { %v1604_v25 = vadd.f32 %v226_v24, %v225_v19  ;;  %235 = vxpose.xlu1.b32.end [2/2] (short) %v226_v24, 128  ;;  %175 = vmatpush.msra.mxu1 %v1593_v18 }
  0xa1   :  { %v228_v8 = vrot.slane %v1604_v25, 4 }
  0xa3   :  { %v229_v10 = vadd.f32 %v228_v8, %v1604_v25 }
  0xa5   :  { %v230_v11 = vrot.slane %v229_v10, 2 }
  0xa7   :  { %v231_v14 = vadd.f32 %v230_v11, %v229_v10 }
  0xa9   :  { %v232_v15 = vrot.slane %v231_v14, 1 }
  0xab   :  { %v1641_v19 = vadd.f32 %v232_v15, %v231_v14 }
  0xf2   :  { %1442 = vset.pattern.permute.xlu1 %v1514_v2 }
  0xff   :  { %1443 = vset.pattern.permute.xlu2 %v1514_v2 }
 0x12e   :  { %v95_v35 = vpop.trf.xlu2 }
 0x12f   :  { %1377 = vmatmul.msk.f32.vlgmr.msra.gmra.mxu1 %vm111_vm1, %v95_v35 }
 0x136   :  { %v96_v37 = vpop.trf.xlu2 }
 0x137   :  { %1378 = vmatmul.msk.f32.gmra.mxu1 %vm111_vm1, %v96_v37 }
 0x13b   :  { %v250_v26 = vpop.trf.xlu1 }
 0x13c   :  { %1393 = vmatmul.msk.f32.vlgmr.msra.gmra.mxu2 %vm111_vm1, %v250_v26 }
 0x13e   :  { %v97_v39 = vpop.trf.xlu2 }
 0x13f   :  { %1379 = vmatmul.msk.f32.gmra.mxu1 %vm111_vm1, %v97_v39 }
 0x143   :  { %v251_v27 = vpop.trf.xlu1 }
 0x144   :  { %1394 = vmatmul.msk.f32.gmra.mxu2 %vm111_vm1, %v251_v27 }
 0x146   :  { %v98_v42 = vpop.trf.xlu2 }
 0x147   :  { %1380 = vmatmul.msk.f32.gmra.mxu1 %vm111_vm1, %v98_v42 }
 0x14b   :  { %v252_v28 = vpop.trf.xlu1 }
 0x14c   :  { %1395 = vmatmul.msk.f32.gmra.mxu2 %vm111_vm1, %v252_v28 }
 0x14e   :  { %v99_v44 = vpop.trf.xlu2 }
 0x14f   :  { %1381 = vmatmul.msk.f32.gmra.mxu1 %vm111_vm1, %v99_v44 }
 0x153   :  { %v253_v29 = vpop.trf.xlu1 }
 0x154   :  { %1396 = vmatmul.msk.f32.gmra.mxu2 %vm111_vm1, %v253_v29 }
 0x156   :  { %v100_v46 = vpop.trf.xlu2 }
 0x157   :  { %1382 = vmatmul.msk.f32.gmra.mxu1 %vm111_vm1, %v100_v46 }
 0x15b   :  { %v254_v30 = vpop.trf.xlu1 }
 0x15c   :  { %1397 = vmatmul.msk.f32.gmra.mxu2 %vm111_vm1, %v254_v30 }
 0x15e   :  { %v101_v48 = vpop.trf.xlu2 }
 0x15f   :  { %1383 = vmatmul.msk.f32.gmra.mxu1 %vm111_vm1, %v101_v48 }
 0x163   :  { %v255_v31 = vpop.trf.xlu1 }
 0x164   :  { %1398 = vmatmul.msk.f32.gmra.mxu2 %vm111_vm1, %v255_v31 }
 0x166   :  { %v102_v50 = vpop.trf.xlu2 }
 0x167   :  { %1384 = vmatmul.msk.f32.gmra.mxu1 %vm111_vm1, %v102_v50 }
 0x16b   :  { %v256_v32 = vpop.trf.xlu1 }
 0x16c   :  { %1399 = vmatmul.msk.f32.gmra.mxu2 %vm111_vm1, %v256_v32 }
 0x16e   :  { %v103_v52 = vpop.trf.xlu2 }
 0x16f   :  { %1385 = vmatmul.msk.f32.gmra.mxu1 %vm111_vm1, %v103_v52 }
 0x173   :  { %v257_v33 = vpop.trf.xlu1 }
 0x174   :  { %1400 = vmatmul.msk.f32.gmra.mxu2 %vm111_vm1, %v257_v33 }
 0x176   :  { %v104_v54 = vpop.trf.xlu2 }
 0x177   :  { %1386 = vmatmul.msk.f32.gmra.mxu1 %vm111_vm1, %v104_v54 }
 0x17b   :  { %v258_v34 = vpop.trf.xlu1 }
 0x17c   :  { %1401 = vmatmul.msk.f32.gmra.mxu2 %vm111_vm1, %v258_v34 }
 0x17e   :  { %v105_v56 = vpop.trf.xlu2 }
 0x17f   :  { %1387 = vmatmul.msk.f32.gmra.mxu1 %vm111_vm1, %v105_v56 }
 0x183   :  { %v259_v36 = vpop.trf.xlu1 }
 0x184   :  { %1402 = vmatmul.msk.f32.gmra.mxu2 %vm111_vm1, %v259_v36 }
 0x186   :  { %v106_v58 = vpop.trf.xlu2 }
 0x187   :  { %1388 = vmatmul.msk.f32.gmra.mxu1 %vm111_vm1, %v106_v58 }
 0x18b   :  { %v260_v38 = vpop.trf.xlu1 }
 0x18c   :  { %1403 = vmatmul.msk.f32.gmra.mxu2 %vm111_vm1, %v260_v38 }
 0x18e   :  { %v107_v60 = vpop.trf.xlu2 }
 0x18f   :  { %1389 = vmatmul.msk.f32.gmra.mxu1 %vm111_vm1, %v107_v60 }
 0x193   :  { %v261_v40 = vpop.trf.xlu1 }
 0x194   :  { %1404 = vmatmul.msk.f32.gmra.mxu2 %vm111_vm1, %v261_v40 }
 0x196   :  { %v108_v62 = vpop.trf.xlu2 }
 0x197   :  { %1390 = vmatmul.msk.f32.gmra.mxu1 %vm111_vm1, %v108_v62 }
 0x19b   :  { %v262_v41 = vpop.trf.xlu1 }
 0x19c   :  { %1405 = vmatmul.msk.f32.gmra.mxu2 %vm111_vm1, %v262_v41 }
 0x19e   :  { %v109_v0 = vpop.trf.xlu2 }
 0x19f   :  { %1391 = vmatmul.msk.f32.gmra.mxu1 %vm111_vm1, %v109_v0 }
 0x1a3   :  { %v263_v43 = vpop.trf.xlu1 }
 0x1a4   :  { %1406 = vmatmul.msk.f32.gmra.mxu2 %vm111_vm1, %v263_v43 }
 0x1a6   :  { %v110_v2 = vpop.trf.xlu2 }
 0x1a7   :  { %1392 = vmatmul.msk.f32.gmra.mxu1 %vm111_vm1, %v110_v2 }
 0x1ab   :  { %v264_v45 = vpop.trf.xlu1 }
 0x1ac   :  { %1407 = vmatmul.msk.f32.gmra.mxu2 %vm111_vm1, %v264_v45  ;;  %v177_v5 = vpop.f32.mrf.mxu1 }
 0x1ad   :  { %v475_v35 = vmul.f32 2.0, %v177_v5 }
 0x1b3   :  { %v265_v47 = vpop.trf.xlu1 }
 0x1b4   :  { %1408 = vmatmul.msk.f32.gmra.mxu2 %vm111_vm1, %v265_v47  ;;  %v180_v7 = vpop.f32.mrf.mxu1 }
 0x1b5   :  { %v476_v36 = vmul.f32 2.0, %v180_v7 }
 0x1bc   :  { %v183_v12 = vpop.f32.mrf.mxu1 }
 0x1bd   :  { %v477_v41 = vmul.f32 2.0, %v183_v12 }
 0x1bf   :  { %v331_v49 = vpop.f32.mrf.mxu2 }
 0x1c0   :  { %381 = vperm.xlu0 %1441, %v331_v49  }
 0x1c4   :  { %v186_v16 = vpop.f32.mrf.mxu1 }
 0x1c5   :  { %v478_v49 = vmul.f32 2.0, %v186_v16 }
 0x1c7   :  { %v334_v51 = vpop.f32.mrf.mxu2 }
 0x1c8   :  { %386 = vperm.xlu1 %1442, %v334_v51  }
 0x1cc   :  { %v189_v24 = vpop.f32.mrf.mxu1 }
 0x1cd   :  { %v479_v52 = vmul.f32 2.0, %v189_v24 }
 0x1cf   :  { %v337_v53 = vpop.f32.mrf.mxu2 }
 0x1d0   :  { %391 = vperm.xlu2 %1443, %v337_v53  }
 0x1d4   :  { %v192_v26 = vpop.f32.mrf.mxu1 }
 0x1d5   :  { %v480_v60 = vmul.f32 2.0, %v192_v26 }
 0x1d7   :  { %v340_v55 = vpop.f32.mrf.mxu2 }
 0x1d8   :  { %396 = vperm.xlu0 %1441, %v340_v55  }
 0x1dc   :  { %v195_v28 = vpop.f32.mrf.mxu1 }
 0x1dd   :  { %v481_v2 = vmul.f32 2.0, %v195_v28 }
 0x1df   :  { %v343_v57 = vpop.f32.mrf.mxu2 }
 0x1e0   :  { %401 = vperm.xlu0 %1441, %v343_v57  }
 0x1e4   :  { %v198_v31 = vpop.f32.mrf.mxu1 }
 0x1e7   :  { %v346_v59 = vpop.f32.mrf.mxu2 }
 0x1e8   :  { %406 = vperm.xlu0 %1441, %v346_v59  }
 0x1ec   :  { %v201_v34 = vpop.f32.mrf.mxu1 }
 0x1ef   :  { %v349_v61 = vpop.f32.mrf.mxu2 }
 0x1f0   :  { %411 = vperm.xlu0 %1441, %v349_v61  }
 0x1f4   :  { %v204_v48 = vpop.f32.mrf.mxu1 }
 0x1f7   :  { %v352_v63 = vpop.f32.mrf.mxu2 }
 0x1f8   :  { %416 = vperm.xlu0 %1441, %v352_v63  }
 0x1fc   :  { %v207_v58 = vpop.f32.mrf.mxu1 }
 0x1ff   :  { %v355_v1 = vpop.f32.mrf.mxu2 }
 0x200   :  { %421 = vperm.xlu0 %1441, %v355_v1  }
 0x204   :  { %v210_v15 = vpop.f32.mrf.mxu1 }
 0x207   :  { %v358_v3 = vpop.f32.mrf.mxu2 }
 0x208   :  { %426 = vperm.xlu0 %1441, %v358_v3  }
 0x20f   :  { %v361_v4 = vpop.f32.mrf.mxu2 }
 0x210   :  { %431 = vperm.xlu0 %1441, %v361_v4  }
 0x217   :  { %v364_v6 = vpop.f32.mrf.mxu2 }
 0x218   :  { %436 = vperm.xlu0 %1441, %v364_v6   ;;  %v482_v6 = vmul.f32 2.0, %v198_v31 }
 0x21f   :  { %v367_v9 = vpop.f32.mrf.mxu2 }
 0x220   :  { %441 = vperm.xlu0 %1441, %v367_v9  }
 0x227   :  { %v370_v13 = vpop.f32.mrf.mxu2 }
 0x228   :  { %446 = vperm.xlu0 %1441, %v370_v13  }
 0x22a   :  { %v392_v37 = vpop.permute.xlu2 %391 }
 0x22b   :  { %v461_v40 = vadd.f32 %v392_v37, %v1641_v19 }
 0x22d   :  { %v493_v44 = vsub.f32 %v461_v40, %v477_v41  ;;  %v485_v41 = vmul.f32 2.0, %v207_v58 }
 0x22f   :  { %v373_v17 = vpop.f32.mrf.mxu2  ;;  %v1652_v50 = vmax.f32 %v493_v44, 0.0 }
 0x230   :  { %451 = vperm.xlu0 %1441, %v373_v17  }
 0x231   :  { %vm554_vm2 = vcmp.eq.f32.partialorder %v1652_v50, inf  ;;  %vm556_vm7 = vcmp.eq.f32.partialorder %v1652_v50, 0.0 }
 0x232   :  { %v382_v20 = vpop.permute.xlu0 %381 }
 0x233   :  { %v459_v21 = vadd.f32 %v382_v20, %v1641_v19 }
 0x235   :  { %v491_v42 = vsub.f32 %v459_v21, %v475_v35  ;;  %v483_v21 = vmul.f32 2.0, %v201_v34  ;;  %v484_v35 = vmul.f32 2.0, %v204_v48  ;;  %v486_v48 = vmul.f32 2.0, %v210_v15 }
 0x237   :  { %v376_v22 = vpop.f32.mrf.mxu2  ;;  %v1648_v45 = vmax.f32 %v491_v42, 0.0 }
 0x238   :  { %456 = vperm.xlu0 %1441, %v376_v22  }
 0x239   :  { %1450 = vrsqrt.f32 %v1648_v45  ;;  %vm530_vm3 = vcmp.eq.f32.partialorder %v1648_v45, inf  ;;  %vm532_vm5 = vcmp.eq.f32.partialorder %v1648_v45, 0.0 }
 0x23a   :  { %v387_v33 = vpop.permute.xlu1 %386 }
 0x23b   :  { %v460_v38 = vadd.f32 %v387_v33, %v1641_v19 }
 0x23d   :  { %v492_v43 = vsub.f32 %v460_v38, %v476_v36 }
 0x23f   :  { %v1650_v46 = vmax.f32 %v492_v43, 0.0  ;;  %v1451_v54 = vpop.eup %1450 }
 0x240   :  { %v524_v59 = vmul.f32 %v1451_v54, %v1648_v45 }
 0x241   :  { %1452 = vrsqrt.f32 %v1650_v46  ;;  %vm542_vm4 = vcmp.eq.f32.partialorder %v1650_v46, inf  ;;  %vm544_vm6 = vcmp.eq.f32.partialorder %v1650_v46, 0.0 }
 0x242   :  { %1454 = vrsqrt.f32 %v1652_v50  ;;  %v525_v4 = vmul.f32 %v1451_v54, %v524_v59 }
 0x244   :  { %v526_v13 = vmul.f32 0.5, %v525_v4 }
 0x247   :  { %v1453_v57 = vpop.eup %1452 }
 0x248   :  { %v1455_v61 = vpop.eup %1454  ;;  %v536_v62 = vmul.f32 %v1453_v57, %v1650_v46 }
 0x249   :  { %v548_v3 = vmul.f32 %v1455_v61, %v1652_v50 }
 0x24a   :  { %v397_v27 = vpop.permute.xlu0 %396  ;;  %v537_v8 = vmul.f32 %v1453_v57, %v536_v62 }
 0x24b   :  { %v462_v25 = vadd.f32 %v397_v27, %v1641_v19  ;;  %v549_v12 = vmul.f32 %v1455_v61, %v548_v3 }
 0x24c   :  { %v538_v16 = vmul.f32 0.5, %v537_v8 }
 0x24d   :  { %v494_v51 = vsub.f32 %v462_v25, %v478_v49  ;;  %v550_v27 = vmul.f32 0.5, %v549_v12  ;;  %v527_v25 = vsub.f32 1.5, %v526_v13 }
 0x24f   :  { %v1657_v55 = vmax.f32 %v494_v51, 0.0  ;;  %v551_v36 = vsub.f32 1.5, %v550_v27  ;;  %v528_v37 = vmul.f32 %v1451_v54, %v527_v25 }
 0x251   :  { %1456 = vrsqrt.f32 %v1657_v55  ;;  %v552_v51 = vmul.f32 %v1455_v61, %v551_v36  ;;  %vm566_vm8 = vcmp.eq.f32.partialorder %v1657_v55, inf  ;;  %vm568_vm9 = vcmp.eq.f32.partialorder %v1657_v55, 0.0 }
 0x252   :  { %v402_v29 = vpop.permute.xlu0 %401 }
 0x253   :  { %v463_v30 = vadd.f32 %v402_v29, %v1641_v19  ;;  %v553_v3 = vmul.f32 %v552_v51, %v1652_v50 }
 0x255   :  { %v495_v56 = vsub.f32 %v463_v30, %v479_v52  ;;  %v539_v30 = vsub.f32 1.5, %v538_v16  ;;  %v529_v52 = vmul.f32 %v528_v37, %v1648_v45 }
 0x257   :  { %v1662_v63 = vmax.f32 %v495_v56, 0.0  ;;  %v1669_v10 = vpop.eup %1456  ;;  %v540_v38 = vmul.f32 %v1453_v57, %v539_v30  ;;  %v531_v4 = vsel %vm530_vm3, %v1648_v45, %v529_v52 }
 0x258   :  { %v560_v22 = vmul.f32 %v1669_v10, %v1657_v55 }
 0x259   :  { %1458 = vrsqrt.f32 %v1662_v63  ;;  %v541_v56 = vmul.f32 %v540_v38, %v1650_v46  ;;  %vm578_vm10 = vcmp.eq.f32.partialorder %v1662_v63, inf  ;;  %vm580_vm11 = vcmp.eq.f32.partialorder %v1662_v63, 0.0 }
 0x25a   :  { %v407_v32 = vpop.permute.xlu0 %406 }
 0x25b   :  { %v464_v0 = vadd.f32 %v407_v32, %v1641_v19  ;;  %v561_v32 = vmul.f32 %v1669_v10, %v560_v22 }
 0x25d   :  { %v496_v9 = vsub.f32 %v464_v0, %v480_v60  ;;  %v562_v42 = vmul.f32 0.5, %v561_v32 }
 0x25f   :  { %v1671_v17 = vmax.f32 %v496_v9, 0.0  ;;  %v1676_v24 = vpop.eup %1458  ;;  %v563_v60 = vsub.f32 1.5, %v562_v42 }
 0x260   :  { %v572_v33 = vmul.f32 %v1676_v24, %v1662_v63 }
 0x261   :  { %1460 = vrsqrt.f32 %v1671_v17  ;;  %vm590_vm12 = vcmp.eq.f32.partialorder %v1671_v17, inf  ;;  %vm592_vm13 = vcmp.eq.f32.partialorder %v1671_v17, 0.0 }
 0x262   :  { %v412_v39 = vpop.permute.xlu0 %411  ;;  %v573_v43 = vmul.f32 %v1676_v24, %v572_v33 }
 0x263   :  { %v465_v1 = vadd.f32 %v412_v39, %v1641_v19 }
 0x264   :  { %v574_v62 = vmul.f32 0.5, %v573_v43 }
 0x265   :  { %v497_v11 = vsub.f32 %v465_v1, %v481_v2  ;;  %v533_v1 = vand.u32 2147483648, %v1648_v45  ;;  %v716_v45 = vld [vmem:[%s2070_s3 + $0x8] sm:$0xff] }
 0x266   :  { %v575_v12 = vsub.f32 1.5, %v574_v62 }
 0x267   :  { %v1678_v26 = vmax.f32 %v497_v11, 0.0  ;;  %v1693_v49 = vpop.eup %1460  ;;  %v564_v11 = vmul.f32 %v1669_v10, %v563_v60  ;;  %v557_v10 = vand.u32 2147483648, %v1652_v50 }
 0x268   :  { %v584_v0 = vmul.f32 %v1693_v49, %v1671_v17  ;;  %v576_v33 = vmul.f32 %v1676_v24, %v575_v12  ;;  %v717_v24 = vld [vmem:[%s2070_s3 + $0x10] sm:$0xff]  ;;  %v581_v12 = vand.u32 2147483648, %v1662_v63 }
 0x269   :  { %1462 = vrsqrt.f32 %v1678_v26  ;;  %v565_v32 = vmul.f32 %v564_v11, %v1657_v55  ;;  %vm602_vm14 = vcmp.eq.f32.partialorder %v1678_v26, inf  ;;  %vm604_vm0 = vcmp.eq.f32.partialorder %v1678_v26, 0.0 }
 0x26a   :  { %v417_v47 = vpop.permute.xlu0 %416  ;;  %v585_v13 = vmul.f32 %v1693_v49, %v584_v0 }
 0x26b   :  { %v466_v5 = vadd.f32 %v417_v47, %v1641_v19  ;;  %v213_v47 = vpop.f32.mrf.mxu1 }
 0x26c   :  { %v487_v16 = vmul.f32 2.0, %v213_v47  ;;  %v577_v47 = vmul.f32 %v576_v33, %v1662_v63 }
 0x26d   :  { %v498_v14 = vsub.f32 %v466_v5, %v482_v6  ;;  %v545_v5 = vand.u32 2147483648, %v1650_v46  ;;  %v543_v6 = vsel %vm542_vm4, %v1650_v46, %v541_v56 }
 0x26f   :  { %v1680_v28 = vmax.f32 %v498_v14, 0.0  ;;  %v1696_v54 = vpop.eup %1462  ;;  %v546_v22 = vsel %vm544_vm6, %v545_v5, %v543_v6  ;;  %v718_v5 = vld [vmem:[%s2070_s3 + $0x18] sm:$0xff]  ;;  %v579_v6 = vsel %vm578_vm10, %v1662_v63, %v577_v47  ;;  %v719_v63 = vld [vmem:[%s2070_s3 + $0x20] sm:$0xff] }
 0x271   :  { %1464 = vrsqrt.f32 %v1680_v28  ;;  %vm614_vm15 = vcmp.eq.f32.partialorder %v1680_v28, inf }
 0x272   :  { %v422_v53 = vpop.permute.xlu0 %421 }
 0x273   :  { %v467_v20 = vadd.f32 %v422_v53, %v1641_v19  ;;  %v216_v25 = vpop.f32.mrf.mxu1 }
 0x275   :  { %v499_v31 = vsub.f32 %v467_v20, %v483_v21  ;;  %v555_v20 = vsel %vm554_vm2, %v1652_v50, %v553_v3  ;;  %v534_v21 = vsel %vm532_vm5, %v533_v1, %v531_v4  ;;  %v567_v50 = vsel %vm566_vm8, %v1657_v55, %v565_v32 }
 0x276   :  { %v558_v38 = vsel %vm556_vm7, %v557_v10, %v555_v20  ;;  %v593_v32 = vand.u32 2147483648, %v1671_v17  ;;  %vm616_vm2 = vcmp.eq.f32.partialorder %v1680_v28, 0.0 }
 0x277   :  { %v1689_v39 = vmax.f32 %v499_v31, 0.0  ;;  %v1701_v59 = vpop.eup %1464 }
 0x278   :  { %v608_v8 = vmul.f32 %v1701_v59, %v1680_v28 }
 0x279   :  { %1466 = vrsqrt.f32 %v1689_v39  ;;  %vm626_vm3 = vcmp.eq.f32.partialorder %v1689_v39, inf  ;;  %vm628_vm4 = vcmp.eq.f32.partialorder %v1689_v39, 0.0 }
 0x27a   :  { %v427_v7 = vpop.permute.xlu0 %426  ;;  %v609_v30 = vmul.f32 %v1701_v59, %v608_v8 }
 0x27b   :  { %v468_v34 = vadd.f32 %v427_v7, %v1641_v19  ;;  %v596_v7 = vmul.f32 %v1696_v54, %v1678_v26  ;;  %v219_v11 = vpop.f32.mrf.mxu1 }
 0x27c   :  { %v610_v43 = vmul.f32 0.5, %v609_v30 }
 0x27d   :  { %v500_v44 = vsub.f32 %v468_v34, %v484_v35  ;;  %v597_v46 = vmul.f32 %v1696_v54, %v596_v7  ;;  %v586_v34 = vmul.f32 0.5, %v585_v13 }
 0x27e   :  { %v611_v3 = vsub.f32 1.5, %v610_v43 }
 0x27f   :  { %v1705_v61 = vmax.f32 %v500_v44, 0.0  ;;  %v1724_v14 = vpop.eup %1466  ;;  %v598_v42 = vmul.f32 0.5, %v597_v46 }
 0x280   :  { %v620_v35 = vmul.f32 %v1724_v14, %v1689_v39 }
 0x281   :  { %1468 = vrsqrt.f32 %v1705_v61  ;;  %vm638_vm5 = vcmp.eq.f32.partialorder %v1705_v61, inf  ;;  %vm640_vm6 = vcmp.eq.f32.partialorder %v1705_v61, 0.0 }
 0x282   :  { %v432_v29 = vpop.permute.xlu0 %431  ;;  %v621_v51 = vmul.f32 %v1724_v14, %v620_v35 }
 0x283   :  { %v469_v40 = vadd.f32 %v432_v29, %v1641_v19  ;;  %v715_v29 = vld [vmem:[%s2070_s3] sm:$0xff] }
 0x284   :  { %v622_v8 = vmul.f32 0.5, %v621_v51  ;;  %v605_v51 = vand.u32 2147483648, %v1678_v26 }
 0x285   :  { %v501_v57 = vsub.f32 %v469_v40, %v485_v41  ;;  %v1752_v40 = vmul.f32 %v715_v29, %v534_v21  ;;  %v1754_v41 = vmul.f32 %v716_v45, %v546_v22  ;;  %v582_v29 = vsel %vm580_vm11, %v581_v12, %v579_v6 }
 0x286   :  { %v623_v46 = vsub.f32 1.5, %v622_v8  ;;  %v1813_v35 = vmul.f32 %v719_v63, %v582_v29 }
 0x287   :  { %v1719_v9 = vmax.f32 %v501_v57, 0.0  ;;  %v1750_v37 = vpop.eup %1468  ;;  %v488_v57 = vmul.f32 2.0, %v216_v25  ;;  %v747_v60 = vadd.f32 %v1754_v41, %v1752_v40 }
 0x288   :  { %v632_v56 = vmul.f32 %v1750_v37, %v1705_v61 }
 0x289   :  { %1470 = vrsqrt.f32 %v1719_v9  ;;  %vm650_vm7 = vcmp.eq.f32.partialorder %v1719_v9, inf  ;;  %vm652_vm8 = vcmp.eq.f32.partialorder %v1719_v9, 0.0 }
 0x28a   :  { %v437_v53 = vpop.permute.xlu0 %436  ;;  %v633_v13 = vmul.f32 %v1750_v37, %v632_v56 }
 0x28b   :  { %v470_v58 = vadd.f32 %v437_v53, %v1641_v19  ;;  %v569_v53 = vand.u32 2147483648, %v1657_v55 }
 0x28d   :  { %v502_v2 = vsub.f32 %v470_v58, %v486_v48  ;;  %v587_v48 = vsub.f32 1.5, %v586_v34  ;;  %v1771_v58 = vmul.f32 %v717_v24, %v558_v38  ;;  %v570_v1 = vsel %vm568_vm9, %v569_v53, %v567_v50 }
 0x28e   :  { %v1792_v10 = vmul.f32 %v718_v5, %v570_v1  ;;  %v624_v50 = vmul.f32 %v1724_v14, %v623_v46 }
 0x28f   :  { %v1728_v15 = vmax.f32 %v502_v2, 0.0  ;;  %v1765_v52 = vpop.eup %1470  ;;  %v599_v2 = vsub.f32 1.5, %v598_v42  ;;  %v588_v7 = vmul.f32 %v1693_v49, %v587_v48  ;;  %v748_v21 = vadd.f32 %v747_v60, %v1771_v58 }
 0x290   :  { %v644_v55 = vmul.f32 %v1765_v52, %v1719_v9  ;;  %v625_v5 = vmul.f32 %v624_v50, %v1689_v39  ;;  %v641_v50 = vand.u32 2147483648, %v1705_v61 }
 0x291   :  { %1472 = vrsqrt.f32 %v1728_v15  ;;  %v600_v22 = vmul.f32 %v1696_v54, %v599_v2  ;;  %v589_v45 = vmul.f32 %v588_v7, %v1671_v17  ;;  %v634_v54 = vmul.f32 0.5, %v633_v13 }
 0x292   :  { %v442_v27 = vpop.permute.xlu0 %441  ;;  %v645_v30 = vmul.f32 %v1765_v52, %v644_v55  ;;  %v749_v42 = vadd.f32 %v748_v21, %v1792_v10  ;;  %v720_v55 = vld [vmem:[%s2070_s3 + $0x28] sm:$0xff]  ;;  %vm662_vm9 = vcmp.eq.f32.partialorder %v1728_v15, inf  ;;  %vm664_vm11 = vcmp.eq.f32.partialorder %v1728_v15, 0.0 }
 0x293   :  { %v471_v31 = vadd.f32 %v442_v27, %v1641_v19  ;;  %v612_v27 = vmul.f32 %v1701_v59, %v611_v3  ;;  %v489_v59 = vmul.f32 2.0, %v219_v11  ;;  %v591_v43 = vsel %vm590_vm12, %v1671_v17, %v589_v45 }
 0x294   :  { %v646_v47 = vmul.f32 0.5, %v645_v30  ;;  %v635_v53 = vsub.f32 1.5, %v634_v54  ;;  %v594_v14 = vsel %vm592_vm13, %v593_v32, %v591_v43  ;;  %v617_v11 = vand.u32 2147483648, %v1680_v28 }
 0x295   :  { %v503_v36 = vsub.f32 %v471_v31, %v487_v16  ;;  %v613_v38 = vmul.f32 %v612_v27, %v1680_v28  ;;  %v1849_v63 = vmul.f32 %v720_v55, %v594_v14  ;;  %v665_v55 = vand.u32 2147483648, %v1728_v15 }
 0x296   :  { %v647_v6 = vsub.f32 1.5, %v646_v47  ;;  %v636_v12 = vmul.f32 %v1750_v37, %v635_v53  ;;  %v627_v37 = vsel %vm626_vm3, %v1689_v39, %v625_v5 }
 0x297   :  { %v1760_v44 = vmax.f32 %v503_v36, 0.0  ;;  %v1777_v0 = vpop.eup %1472  ;;  %v601_v36 = vmul.f32 %v600_v22, %v1678_v26  ;;  %v721_v22 = vld [vmem:[%s2070_s3 + $0x30] sm:$0xff] }
 0x298   :  { %v656_v20 = vmul.f32 %v1777_v0, %v1728_v15 }
 0x299   :  { %1474 = vrsqrt.f32 %v1760_v44  ;;  %v603_v3 = vsel %vm602_vm14, %v1678_v26, %v601_v36  ;;  %v648_v26 = vmul.f32 %v1765_v52, %v647_v6  ;;  %v723_v36 = vld [vmem:[%s2070_s3 + $0x40] sm:$0xff]  ;;  %vm674_vm10 = vcmp.eq.f32.partialorder %v1760_v44, inf }
 0x29a   :  { %v447_v62 = vpop.permute.xlu0 %446  ;;  %v657_v34 = vmul.f32 %v1777_v0, %v656_v20  ;;  %vm676_vm12 = vcmp.eq.f32.partialorder %v1760_v44, 0.0 }
 0x29b   :  { %v472_v4 = vadd.f32 %v447_v62, %v1641_v19  ;;  %v750_v62 = vadd.f32 %v749_v42, %v1813_v35  ;;  %v649_v42 = vmul.f32 %v648_v26, %v1719_v9 }
 0x29c   :  { %v658_v60 = vmul.f32 0.5, %v657_v34 }
 0x29d   :  { %v504_v16 = vsub.f32 %v472_v4, %v488_v57  ;;  %v222_v57 = vpop.f32.mrf.mxu1  ;;  %v615_v4 = vsel %vm614_vm15, %v1680_v28, %v613_v38  ;;  %v722_v28 = vld [vmem:[%s2070_s3 + $0x38] sm:$0xff] }
 0x29e   :  { %v490_v17 = vmul.f32 2.0, %v222_v57  ;;  %v659_v20 = vsub.f32 1.5, %v658_v60  ;;  %v618_v29 = vsel %vm616_vm2, %v617_v11, %v615_v4  ;;  %v651_v60 = vsel %vm650_vm7, %v1719_v9, %v649_v42  ;;  %v725_v11 = vld [vmem:[%s2070_s3 + $0x50] sm:$0xff] }
 0x29f   :  { %v1795_v49 = vpop.eup %1474  ;;  %v1799_v25 = vmax.f32 %v504_v16, 0.0  ;;  %v606_v16 = vsel %vm604_vm0, %v605_v51, %v603_v3  ;;  %v1867_v38 = vmul.f32 %v722_v28, %v618_v29  ;;  %v724_v3 = vld [vmem:[%s2070_s3 + $0x48] sm:$0xff] }
 0x2a0   :  { %v668_v31 = vmul.f32 %v1795_v49, %v1760_v44  ;;  %v1858_v54 = vmul.f32 %v721_v22, %v606_v16 }
 0x2a1   :  { %1476 = vrsqrt.f32 %v1799_v25  ;;  %vm686_vm13 = vcmp.eq.f32.partialorder %v1799_v25, inf  ;;  %v689_v26 = vand.u32 2147483648, %v1799_v25  ;;  %vm688_vm15 = vcmp.eq.f32.partialorder %v1799_v25, 0.0 }
 0x2a2   :  { %v452_v33 = vpop.permute.xlu0 %451  ;;  %v669_v48 = vmul.f32 %v1795_v49, %v668_v31  ;;  %v629_v31 = vand.u32 2147483648, %v1689_v39 }
 0x2a3   :  { %v473_v24 = vadd.f32 %v452_v33, %v1641_v19 }
 0x2a4   :  { %v670_v7 = vmul.f32 0.5, %v669_v48  ;;  %v630_v34 = vsel %vm628_vm4, %v629_v31, %v627_v37  ;;  %vm1189_vm4 = vcmask 7168  }
 0x2a5   :  { %v505_v56 = vsub.f32 %v473_v24, %v489_v59  ;;  %v660_v59 = vmul.f32 %v1777_v0, %v659_v20  ;;  %v751_v24 = vadd.f32 %v750_v62, %v1849_v63  ;;  %v677_v20 = vand.u32 2147483648, %v1760_v44 }
 0x2a6   :  { %v671_v45 = vsub.f32 1.5, %v670_v7 }
 0x2a7   :  { %v1477_v1 = vpop.eup %1476  ;;  %v1827_v2 = vmax.f32 %v505_v56, 0.0  ;;  %v752_v47 = vadd.f32 %v751_v24, %v1858_v54  ;;  %v661_v48 = vmul.f32 %v660_v59, %v1728_v15  ;;  %v1879_v56 = vmul.f32 %v723_v36, %v630_v34  ;;  %v728_v59 = vld [vmem:[%s2070_s3 + $0x68] sm:$0xff] }
 0x2a8   :  { %v680_v8 = vmul.f32 %v1477_v1, %v1799_v25  ;;  %v672_v39 = vmul.f32 %v1795_v49, %v671_v45 }
 0x2a9   :  { %1478 = vrsqrt.f32 %v1827_v2  ;;  %v753_v49 = vadd.f32 %v752_v47, %v1867_v38  ;;  %vm698_vm14 = vcmp.eq.f32.partialorder %v1827_v2, inf  ;;  %vm700_vm0 = vcmp.eq.f32.partialorder %v1827_v2, 0.0 }
 0x2aa   :  { %v457_v13 = vpop.permute.xlu0 %456  ;;  %v681_v21 = vmul.f32 %v1477_v1, %v680_v8  ;;  %v673_v62 = vmul.f32 %v672_v39, %v1760_v44 }
 0x2ab   :  { %v474_v27 = vadd.f32 %v457_v13, %v1641_v19  ;;  %v637_v19 = vmul.f32 %v636_v12, %v1705_v61  ;;  %v754_v6 = vadd.f32 %v753_v49, %v1879_v56 }
 0x2ac   :  { %v682_v46 = vmul.f32 0.5, %v681_v21  ;;  %v726_v21 = vld [vmem:[%s2070_s3 + $0x58] sm:$0xff] }
 0x2ad   :  { %v506_v30 = vsub.f32 %v474_v27, %v490_v17  ;;  %v639_v43 = vsel %vm638_vm5, %v1705_v61, %v637_v19  ;;  %v663_v61 = vsel %vm662_vm9, %v1728_v15, %v661_v48  ;;  %v675_v17 = vsel %vm674_vm10, %v1760_v44, %v673_v62  ;;  %v727_v44 = vld [vmem:[%s2070_s3 + $0x60] sm:$0xff] }
 0x2ae   :  { %v683_v32 = vsub.f32 1.5, %v682_v46  ;;  %v642_v57 = vsel %vm640_vm6, %v641_v50, %v639_v43  ;;  %v666_v16 = vsel %vm664_vm11, %v665_v55, %v663_v61  ;;  %v678_v37 = vsel %vm676_vm12, %v677_v20, %v675_v17 }
 0x2af   :  { %v1479_v33 = vpop.eup %1478  ;;  %v1862_v52 = vmax.f32 %v506_v30, 0.0  ;;  %v742_v30 = vmul.f32 %v726_v21, %v666_v16  ;;  %v701_v19 = vand.u32 2147483648, %v1827_v2  ;;  %vm1159_vm5 = vcmask 523264  }
 0x2b0   :  { %v692_v0 = vmul.f32 %v1479_v33, %v1827_v2  ;;  %v684_v51 = vmul.f32 %v1477_v1, %v683_v32  ;;  %v653_v1 = vand.u32 2147483648, %v1719_v9  ;;  %v1900_v9 = vmul.f32 %v724_v3, %v642_v57 }
 0x2b1   :  { %1480 = vrsqrt.f32 %v1862_v52  ;;  %vm710_vm2 = vcmp.eq.f32.partialorder %v1862_v52, inf  ;;  %v713_v47 = vand.u32 2147483648, %v1862_v52  ;;  %vm712_vm3 = vcmp.eq.f32.partialorder %v1862_v52, 0.0 }
 0x2b2   :  { %v693_v53 = vmul.f32 %v1479_v33, %v692_v0  ;;  %v685_v4 = vmul.f32 %v684_v51, %v1799_v25  ;;  %v654_v8 = vsel %vm652_vm8, %v653_v1, %v651_v60  ;;  %v755_v45 = vadd.f32 %v754_v6, %v1900_v9 }
 0x2b3   :  { %v741_v29 = vmul.f32 %v725_v11, %v654_v8  ;;  %vm1357_vm6 = vcmask 74752  }
 0x2b4   :  { %v694_v14 = vmul.f32 0.5, %v693_v53  ;;  %v687_v22 = vsel %vm686_vm13, %v1799_v25, %v685_v4  ;;  %v729_v25 = vld [vmem:[%s2070_s3 + $0x70] sm:$0xff] }
 0x2b5   :  { %v690_v31 = vsel %vm688_vm15, %v689_v26, %v687_v22  ;;  %v756_v34 = vadd.f32 %v755_v45, %v741_v29 }
 0x2b6   :  { %v695_v5 = vsub.f32 1.5, %v694_v14  ;;  %v744_v42 = vmul.f32 %v728_v59, %v690_v31 }
 0x2b7   :  { %v1481_v7 = vpop.eup %1480  ;;  %v757_v39 = vadd.f32 %v756_v34, %v742_v30 }
 0x2b8   :  { %v696_v12 = vmul.f32 %v1479_v33, %v695_v5  ;;  %v704_v13 = vmul.f32 %v1481_v7, %v1862_v52  ;;  %v743_v33 = vmul.f32 %v727_v44, %v678_v37 }
 0x2ba   :  { %v697_v15 = vmul.f32 %v696_v12, %v1827_v2  ;;  %v705_v27 = vmul.f32 %v1481_v7, %v704_v13  ;;  %v758_v50 = vadd.f32 %v757_v39, %v743_v33 }
 0x2bc   :  { %v699_v46 = vsel %vm698_vm14, %v1827_v2, %v697_v15  ;;  %v706_v28 = vmul.f32 0.5, %v705_v27  ;;  %v730_v2 = vld [vmem:[%s2070_s3 + $0x78] sm:$0xff]  ;;  %v759_v51 = vadd.f32 %v758_v50, %v744_v42  ;;  %s1516_s3 = smov 64  }
 0x2bd   :  { %v702_v36 = vsel %vm700_vm0, %v701_v19, %v699_v46 }
 0x2be   :  { %v707_v32 = vsub.f32 1.5, %v706_v28  ;;  %v745_v43 = vmul.f32 %v729_v25, %v702_v36 }
 0x2c0   :  { %v708_v24 = vmul.f32 %v1481_v7, %v707_v32  ;;  %v760_v57 = vadd.f32 %v759_v51, %v745_v43 }
 0x2c2   :  { %v709_v0 = vmul.f32 %v708_v24, %v1862_v52 }
 0x2c4   :  { %v711_v48 = vsel %vm710_vm2, %v1862_v52, %v709_v0 }
 0x2c5   :  { %v714_v53 = vsel %vm712_vm3, %v713_v47, %v711_v48 }
 0x2c6   :  { %v746_v49 = vmul.f32 %v730_v2, %v714_v53 }
 0x2c8   :  { %v761_v60 = vadd.f32 %v760_v57, %v746_v49 }
 0x2ca   :  { %v762_v62 = vrot.slane %v761_v60, 4 }
 0x2cc   :  { %v763_v14 = vadd.f32 %v762_v62, %v761_v60 }
 0x2ce   :  { %v764_v3 = vrot.slane %v763_v14, 2 }
 0x2d0   :  { %v765_v1 = vadd.f32 %v764_v3, %v763_v14 }
 0x2d2   :  { %v766_v61 = vrot.slane %v765_v1, 1 }
 0x2d4   :  { %v767_v4 = vadd.f32 %v766_v61, %v765_v1 }
 0x2d6   :  { %v768_v5 = vadd.f32 1e-12, %v767_v4 }
 0x2d8   :  { %1482 = vrcp.f32 %v768_v5 }
 0x2de   :  { %v1483_v6 = vpop.eup %1482 }
 0x2df   :  { %v785_v7 = vmul.f32 %v1483_v6, %v746_v49  ;;  %v784_v8 = vmul.f32 %v1483_v6, %v745_v43  ;;  %v775_v55 = vmul.f32 %v1483_v6, %v1849_v63  ;;  %v783_v52 = vmul.f32 %v1483_v6, %v744_v42 }
 0x2e0   :  { %v782_v11 = vmul.f32 %v1483_v6, %v743_v33  ;;  %v781_v17 = vmul.f32 %v1483_v6, %v742_v30  ;;  %v780_v12 = vmul.f32 %v1483_v6, %v741_v29  ;;  %v779_v13 = vmul.f32 %v1483_v6, %v1900_v9 }
 0x2e1   :  { %786 = vmatpush.msra.mxu3 %v785_v7  ;;  %v778_v16 = vmul.f32 %v1483_v6, %v1879_v56  ;;  %v777_v20 = vmul.f32 %v1483_v6, %v1867_v38  ;;  %v776_v63 = vmul.f32 %v1483_v6, %v1858_v54  ;;  %v774_v21 = vmul.f32 %v1483_v6, %v1813_v35 }
 0x2e2   :  { %v773_v22 = vmul.f32 %v1483_v6, %v1792_v10  ;;  %v772_v15 = vmul.f32 %v1483_v6, %v1771_v58  ;;  %v771_v9 = vmul.f32 %v1483_v6, %v1754_v41  ;;  %v770_v56 = vmul.f32 %v1483_v6, %v1752_v40 }
 0x2e3   :  { %787 = vmatpush.msra.mxu3 %v784_v8 }
 0x2e5   :  { %788 = vmatpush.msra.mxu3 %v783_v52 }
 0x2e7   :  { %789 = vmatpush.msra.mxu3 %v782_v11 }
 0x2e9   :  { %790 = vmatpush.msra.mxu3 %v781_v17 }
 0x2eb   :  { %791 = vmatpush.msra.mxu3 %v780_v12 }
 0x2ed   :  { %792 = vmatpush.msra.mxu3 %v779_v13 }
 0x2ef   :  { %793 = vmatpush.msra.mxu3 %v778_v16 }
 0x2f1   :  { %794 = vmatpush.msra.mxu3 %v777_v20 }
 0x2f3   :  { %795 = vmatpush.msra.mxu3 %v776_v63 }
 0x2f5   :  { %796 = vmatpush.msra.mxu3 %v775_v55 }
 0x2f7   :  { %797 = vmatpush.msra.mxu3 %v774_v21 }
 0x2f9   :  { %798 = vmatpush.msra.mxu3 %v773_v22 }
 0x2fb   :  { %799 = vmatpush.msra.mxu3 %v772_v15 }
 0x2fd   :  { %800 = vmatpush.msra.mxu3 %v771_v9 }
 0x2ff   :  { %801 = vmatpush.msra.mxu3 %v770_v56 }
 0x300   :  { %802 = vmatmul.f32.vlgmr.msra.gmra.mxu3 %v770_v56 }
 0x308   :  { %805 = vmatmul.f32.gmra.mxu3 %v771_v9 }
 0x310   :  { %808 = vmatmul.f32.gmra.mxu3 %v772_v15 }
 0x318   :  { %811 = vmatmul.f32.gmra.mxu3 %v773_v22 }
 0x320   :  { %814 = vmatmul.f32.gmra.mxu3 %v774_v21 }
 0x328   :  { %817 = vmatmul.f32.gmra.mxu3 %v775_v55 }
 0x330   :  { %820 = vmatmul.f32.gmra.mxu3 %v776_v63 }
 0x338   :  { %823 = vmatmul.f32.gmra.mxu3 %v777_v20 }
 0x340   :  { %826 = vmatmul.f32.gmra.mxu3 %v778_v16 }
 0x348   :  { %829 = vmatmul.f32.gmra.mxu3 %v779_v13 }
 0x350   :  { %832 = vmatmul.f32.gmra.mxu3 %v780_v12 }
 0x358   :  { %835 = vmatmul.f32.gmra.mxu3 %v781_v17 }
 0x360   :  { %838 = vmatmul.f32.gmra.mxu3 %v782_v11 }
 0x368   :  { %841 = vmatmul.f32.gmra.mxu3 %v783_v52 }
 0x370   :  { %844 = vmatmul.f32.gmra.mxu3 %v784_v8 }
 0x378   :  { %847 = vmatmul.f32.gmra.mxu3 %v785_v7 }
 0x383   :  { %v803_v41 = vpop.f32.mrf.mxu3 }
 0x38b   :  { %v806_v58 = vpop.f32.mrf.mxu3 }
 0x393   :  { %v809_v40 = vpop.f32.mrf.mxu3 }
 0x39b   :  { %v812_v10 = vpop.f32.mrf.mxu3 }
 0x3a3   :  { %v815_v35 = vpop.f32.mrf.mxu3 }
 0x3ab   :  { %v818_v54 = vpop.f32.mrf.mxu3 }
 0x3b3   :  { %v821_v38 = vpop.f32.mrf.mxu3 }
 0x3bb   :  { %v824_v27 = vpop.f32.mrf.mxu3 }
 0x3c3   :  { %v827_v29 = vpop.f32.mrf.mxu3 }
 0x3cb   :  { %v830_v37 = vpop.f32.mrf.mxu3 }
 0x3d3   :  { %v833_v26 = vpop.f32.mrf.mxu3 }
 0x3db   :  { %v836_v44 = vpop.f32.mrf.mxu3 }
 0x3e3   :  { %v839_v45 = vpop.f32.mrf.mxu3 }
 0x3eb   :  { %v842_v46 = vpop.f32.mrf.mxu3 }
 0x3f3   :  { %v845_v28 = vpop.f32.mrf.mxu3 }
 0x3fb   :  { %v848_v30 = vpop.f32.mrf.mxu3 }
 0x3fc   :  { %851 = vmatpush.msrb.mxu0 %v848_v30 }
 0x3fe   :  { %852 = vmatpush.msrb.mxu0 %v845_v28 }
 0x400   :  { %853 = vmatpush.msrb.mxu0 %v842_v46 }
 0x402   :  { %854 = vmatpush.msrb.mxu0 %v839_v45 }
 0x404   :  { %855 = vmatpush.msrb.mxu0 %v836_v44 }
 0x406   :  { %856 = vmatpush.msrb.mxu0 %v833_v26 }
 0x408   :  { %857 = vmatpush.msrb.mxu0 %v830_v37 }
 0x40a   :  { %858 = vmatpush.msrb.mxu0 %v827_v29 }
 0x40c   :  { %859 = vmatpush.msrb.mxu0 %v824_v27 }
 0x40e   :  { %860 = vmatpush.msrb.mxu0 %v821_v38 }
 0x410   :  { %861 = vmatpush.msrb.mxu0 %v818_v54 }
 0x412   :  { %862 = vmatpush.msrb.mxu0 %v815_v35 }
 0x414   :  { %863 = vmatpush.msrb.mxu0 %v812_v10 }
 0x416   :  { %864 = vmatpush.msrb.mxu0 %v809_v40 }
 0x418   :  { %865 = vmatpush.msrb.mxu0 %v806_v58 }
 0x41a   :  { %866 = vmatpush.msrb.mxu0 %v803_v41 }
 0x41b   :  { %867 = vmatmul.f32.vlgmr.msrb.gmra.mxu0 %v803_v41 }
 0x423   :  { %870 = vmatmul.f32.gmra.mxu0 %v806_v58 }
 0x42b   :  { %873 = vmatmul.f32.gmra.mxu0 %v809_v40 }
 0x433   :  { %876 = vmatmul.f32.gmra.mxu0 %v812_v10 }
 0x43b   :  { %879 = vmatmul.f32.gmra.mxu0 %v815_v35 }
 0x443   :  { %882 = vmatmul.f32.gmra.mxu0 %v818_v54 }
 0x44b   :  { %885 = vmatmul.f32.gmra.mxu0 %v821_v38 }
 0x453   :  { %888 = vmatmul.f32.gmra.mxu0 %v824_v27 }
 0x45b   :  { %891 = vmatmul.f32.gmra.mxu0 %v827_v29 }
 0x463   :  { %894 = vmatmul.f32.gmra.mxu0 %v830_v37 }
 0x46b   :  { %897 = vmatmul.f32.gmra.mxu0 %v833_v26 }
 0x473   :  { %900 = vmatmul.f32.gmra.mxu0 %v836_v44 }
 0x47b   :  { %903 = vmatmul.f32.gmra.mxu0 %v839_v45 }
 0x483   :  { %906 = vmatmul.f32.gmra.mxu0 %v842_v46 }
 0x48b   :  { %909 = vmatmul.f32.gmra.mxu0 %v845_v28 }
 0x493   :  { %912 = vmatmul.f32.gmra.mxu0 %v848_v30 }
 0x498   :  { %v1947_v31 = vpop.f32.mrf.mxu0 }
 0x4a0   :  { %v1949_v19 = vpop.f32.mrf.mxu0 }
 0x4a8   :  { %v1951_v59 = vpop.f32.mrf.mxu0 }
 0x4b0   :  { %v1953_v32 = vpop.f32.mrf.mxu0 }
 0x4b8   :  { %v1955_v33 = vpop.f32.mrf.mxu0 }
 0x4c0   :  { %v1957_v34 = vpop.f32.mrf.mxu0 }
 0x4c8   :  { %v1959_v36 = vpop.f32.mrf.mxu0 }
 0x4d0   :  { %v1961_v25 = vpop.f32.mrf.mxu0 }
 0x4d8   :  { %v1963_v24 = vpop.f32.mrf.mxu0 }
 0x4e0   :  { %v1965_v42 = vpop.f32.mrf.mxu0 }
 0x4e8   :  { %v1967_v39 = vpop.f32.mrf.mxu0 }
 0x4f0   :  { %v1969_v0 = vpop.f32.mrf.mxu0 }
 0x4f8   :  { %v1971_v43 = vpop.f32.mrf.mxu0 }
 0x500   :  { %v1973_v50 = vpop.f32.mrf.mxu0 }
 0x508   :  { %v1975_v47 = vpop.f32.mrf.mxu0 }
 0x510   :  { %v1977_v2 = vpop.f32.mrf.mxu0 }
 0x511   :  { %916 = vmatpush.msrb.mxu1 %v1977_v2 }
 0x513   :  { %917 = vmatpush.msrb.mxu1 %v1975_v47 }
 0x515   :  { %918 = vmatpush.msrb.mxu1 %v1973_v50 }
 0x517   :  { %919 = vmatpush.msrb.mxu1 %v1971_v43 }
 0x519   :  { %920 = vmatpush.msrb.mxu1 %v1969_v0 }
 0x51b   :  { %921 = vmatpush.msrb.mxu1 %v1967_v39 }
 0x51d   :  { %922 = vmatpush.msrb.mxu1 %v1965_v42 }
 0x51f   :  { %923 = vmatpush.msrb.mxu1 %v1963_v24 }
 0x521   :  { %924 = vmatpush.msrb.mxu1 %v1961_v25 }
 0x523   :  { %925 = vmatpush.msrb.mxu1 %v1959_v36 }
 0x525   :  { %926 = vmatpush.msrb.mxu1 %v1957_v34 }
 0x527   :  { %927 = vmatpush.msrb.mxu1 %v1955_v33 }
 0x529   :  { %928 = vmatpush.msrb.mxu1 %v1953_v32 }
 0x52b   :  { %929 = vmatpush.msrb.mxu1 %v1951_v59 }
 0x52d   :  { %930 = vmatpush.msrb.mxu1 %v1949_v19 }
 0x52f   :  { %931 = vmatpush.msrb.mxu1 %v1947_v31 }
 0x530   :  { %932 = vmatmul.f32.vlgmr.msrb.gmra.mxu1 %v1947_v31 }
 0x538   :  { %935 = vmatmul.f32.gmra.mxu1 %v1949_v19 }
 0x540   :  { %938 = vmatmul.f32.gmra.mxu1 %v1951_v59 }
 0x548   :  { %941 = vmatmul.f32.gmra.mxu1 %v1953_v32 }
 0x550   :  { %944 = vmatmul.f32.gmra.mxu1 %v1955_v33 }
 0x558   :  { %947 = vmatmul.f32.gmra.mxu1 %v1957_v34 }
 0x560   :  { %950 = vmatmul.f32.gmra.mxu1 %v1959_v36 }
 0x568   :  { %953 = vmatmul.f32.gmra.mxu1 %v1961_v25 }
 0x570   :  { %956 = vmatmul.f32.gmra.mxu1 %v1963_v24 }
 0x578   :  { %959 = vmatmul.f32.gmra.mxu1 %v1965_v42 }
 0x580   :  { %962 = vmatmul.f32.gmra.mxu1 %v1967_v39 }
 0x588   :  { %965 = vmatmul.f32.gmra.mxu1 %v1969_v0 }
 0x590   :  { %968 = vmatmul.f32.gmra.mxu1 %v1971_v43 }
 0x598   :  { %971 = vmatmul.f32.gmra.mxu1 %v1973_v50 }
 0x5a0   :  { %974 = vmatmul.f32.gmra.mxu1 %v1975_v47 }
 0x5a8   :  { %977 = vmatmul.f32.gmra.mxu1 %v1977_v2 }
 0x5ad   :  { %v933_v48 = vpop.f32.mrf.mxu1 }
 0x5b5   :  { %v936_v51 = vpop.f32.mrf.mxu1 }
 0x5bd   :  { %v939_v53 = vpop.f32.mrf.mxu1 }
 0x5c5   :  { %v942_v49 = vpop.f32.mrf.mxu1 }
 0x5cd   :  { %v945_v57 = vpop.f32.mrf.mxu1 }
 0x5d5   :  { %v948_v60 = vpop.f32.mrf.mxu1 }
 0x5dd   :  { %v951_v62 = vpop.f32.mrf.mxu1 }
 0x5e5   :  { %v954_v14 = vpop.f32.mrf.mxu1 }
 0x5ed   :  { %v957_v3 = vpop.f32.mrf.mxu1 }
 0x5f5   :  { %v960_v1 = vpop.f32.mrf.mxu1 }
 0x5fd   :  { %v963_v61 = vpop.f32.mrf.mxu1 }
 0x605   :  { %v966_v4 = vpop.f32.mrf.mxu1 }
 0x60d   :  { %v969_v5 = vpop.f32.mrf.mxu1 }
 0x615   :  { %v972_v6 = vpop.f32.mrf.mxu1 }
 0x61d   :  { %v975_v7 = vpop.f32.mrf.mxu1 }
 0x625   :  { %v978_v8 = vpop.f32.mrf.mxu1 }
 0x626   :  { %981 = vmatpush.msrb.mxu2 %v978_v8 }
 0x628   :  { %982 = vmatpush.msrb.mxu2 %v975_v7 }
 0x62a   :  { %983 = vmatpush.msrb.mxu2 %v972_v6 }
 0x62c   :  { %984 = vmatpush.msrb.mxu2 %v969_v5 }
 0x62e   :  { %985 = vmatpush.msrb.mxu2 %v966_v4 }
 0x630   :  { %986 = vmatpush.msrb.mxu2 %v963_v61 }
 0x632   :  { %987 = vmatpush.msrb.mxu2 %v960_v1 }
 0x634   :  { %988 = vmatpush.msrb.mxu2 %v957_v3 }
 0x636   :  { %989 = vmatpush.msrb.mxu2 %v954_v14 }
 0x638   :  { %990 = vmatpush.msrb.mxu2 %v951_v62 }
 0x63a   :  { %991 = vmatpush.msrb.mxu2 %v948_v60 }
 0x63c   :  { %992 = vmatpush.msrb.mxu2 %v945_v57 }
 0x63e   :  { %993 = vmatpush.msrb.mxu2 %v942_v49 }
 0x640   :  { %994 = vmatpush.msrb.mxu2 %v939_v53 }
 0x642   :  { %995 = vmatpush.msrb.mxu2 %v936_v51 }
 0x644   :  { %996 = vmatpush.msrb.mxu2 %v933_v48 }
 0x645   :  { %997 = vmatmul.f32.vlgmr.msrb.gmra.mxu2 %v933_v48 }
 0x64d   :  { %1000 = vmatmul.f32.gmra.mxu2 %v936_v51 }
 0x655   :  { %1003 = vmatmul.f32.gmra.mxu2 %v939_v53 }
 0x65d   :  { %1006 = vmatmul.f32.gmra.mxu2 %v942_v49 }
 0x665   :  { %1009 = vmatmul.f32.gmra.mxu2 %v945_v57 }
 0x66d   :  { %1012 = vmatmul.f32.gmra.mxu2 %v948_v60 }
 0x675   :  { %1015 = vmatmul.f32.gmra.mxu2 %v951_v62 }
 0x67d   :  { %1018 = vmatmul.f32.gmra.mxu2 %v954_v14 }
 0x685   :  { %1021 = vmatmul.f32.gmra.mxu2 %v957_v3 }
 0x68d   :  { %1024 = vmatmul.f32.gmra.mxu2 %v960_v1 }
 0x695   :  { %1027 = vmatmul.f32.gmra.mxu2 %v963_v61 }
 0x69d   :  { %1030 = vmatmul.f32.gmra.mxu2 %v966_v4 }
 0x6a5   :  { %1033 = vmatmul.f32.gmra.mxu2 %v969_v5 }
 0x6ad   :  { %1036 = vmatmul.f32.gmra.mxu2 %v972_v6 }
 0x6b5   :  { %1039 = vmatmul.f32.gmra.mxu2 %v975_v7 }
 0x6bd   :  { %1042 = vmatmul.f32.gmra.mxu2 %v978_v8 }
 0x6c8   :  { %v998_v55 = vpop.f32.mrf.mxu2 }
 0x6d0   :  { %v1001_v52 = vpop.f32.mrf.mxu2 }
 0x6d8   :  { %v1004_v11 = vpop.f32.mrf.mxu2 }
 0x6e0   :  { %v1007_v17 = vpop.f32.mrf.mxu2 }
 0x6e8   :  { %v1010_v12 = vpop.f32.mrf.mxu2 }
 0x6f0   :  { %v1013_v13 = vpop.f32.mrf.mxu2 }
 0x6f8   :  { %v1016_v16 = vpop.f32.mrf.mxu2 }
 0x700   :  { %v1019_v20 = vpop.f32.mrf.mxu2 }
 0x708   :  { %v1022_v63 = vpop.f32.mrf.mxu2 }
 0x710   :  { %v1025_v21 = vpop.f32.mrf.mxu2 }
 0x718   :  { %v1028_v22 = vpop.f32.mrf.mxu2 }
 0x720   :  { %v1031_v15 = vpop.f32.mrf.mxu2 }
 0x728   :  { %v1034_v9 = vpop.f32.mrf.mxu2 }
 0x730   :  { %v1037_v56 = vpop.f32.mrf.mxu2 }
 0x738   :  { %v1040_v41 = vpop.f32.mrf.mxu2 }
 0x740   :  { %v1043_v58 = vpop.f32.mrf.mxu2 }
 0x741   :  { %1046 = vmatpush.msra.mxu0 %v1043_v58  ;;  %1415 = vmatpush.msrb.mxu3 %v1043_v58 }
 0x743   :  { %1047 = vmatpush.msra.mxu0 %v1040_v41  ;;  %1416 = vmatpush.msrb.mxu3 %v1040_v41 }
 0x745   :  { %1048 = vmatpush.msra.mxu0 %v1037_v56  ;;  %1417 = vmatpush.msrb.mxu3 %v1037_v56 }
 0x747   :  { %1049 = vmatpush.msra.mxu0 %v1034_v9  ;;  %1418 = vmatpush.msrb.mxu3 %v1034_v9 }
 0x749   :  { %1050 = vmatpush.msra.mxu0 %v1031_v15  ;;  %1419 = vmatpush.msrb.mxu3 %v1031_v15 }
 0x74b   :  { %1051 = vmatpush.msra.mxu0 %v1028_v22  ;;  %1420 = vmatpush.msrb.mxu3 %v1028_v22 }
 0x74d   :  { %1052 = vmatpush.msra.mxu0 %v1025_v21  ;;  %1421 = vmatpush.msrb.mxu3 %v1025_v21 }
 0x74f   :  { %1053 = vmatpush.msra.mxu0 %v1022_v63  ;;  %1422 = vmatpush.msrb.mxu3 %v1022_v63 }
 0x751   :  { %1054 = vmatpush.msra.mxu0 %v1019_v20  ;;  %1423 = vmatpush.msrb.mxu3 %v1019_v20 }
 0x753   :  { %1055 = vmatpush.msra.mxu0 %v1016_v16  ;;  %1424 = vmatpush.msrb.mxu3 %v1016_v16 }
 0x755   :  { %1056 = vmatpush.msra.mxu0 %v1013_v13  ;;  %1425 = vmatpush.msrb.mxu3 %v1013_v13 }
 0x757   :  { %1057 = vmatpush.msra.mxu0 %v1010_v12  ;;  %1426 = vmatpush.msrb.mxu3 %v1010_v12 }
 0x759   :  { %1058 = vmatpush.msra.mxu0 %v1007_v17  ;;  %1427 = vmatpush.msrb.mxu3 %v1007_v17 }
 0x75b   :  { %1059 = vmatpush.msra.mxu0 %v1004_v11  ;;  %1428 = vmatpush.msrb.mxu3 %v1004_v11 }
 0x75d   :  { %1060 = vmatpush.msra.mxu0 %v1001_v52  ;;  %1429 = vmatpush.msrb.mxu3 %v1001_v52 }
 0x75f   :  { %1061 = vmatpush.msra.mxu0 %v998_v55  ;;  %1430 = vmatpush.msrb.mxu3 %v998_v55 }
 0x760   :  { %1062 = vmatmul.f32.vlgmr.msra.gmra.mxu0 %v1947_v31  ;;  %1071 = vmatmul.f32.vlgmr.msrb.gmra.mxu3 %v1953_v32 }
 0x768   :  { %1065 = vmatmul.f32.gmra.mxu0 %v1949_v19  ;;  %1074 = vmatmul.f32.gmra.mxu3 %v1955_v33 }
 0x770   :  { %1068 = vmatmul.f32.gmra.mxu0 %v1951_v59  ;;  %1077 = vmatmul.f32.gmra.mxu3 %v1957_v34 }
 0x778   :  { %1080 = vmatmul.f32.gmra.mxu3 %v1959_v36 }
 0x780   :  { %1083 = vmatmul.f32.gmra.mxu3 %v1961_v25 }
 0x788   :  { %1086 = vmatmul.f32.gmra.mxu3 %v1963_v24 }
 0x790   :  { %1089 = vmatmul.f32.gmra.mxu3 %v1965_v42 }
 0x798   :  { %1092 = vmatmul.f32.gmra.mxu3 %v1967_v39 }
 0x7a0   :  { %1095 = vmatmul.f32.gmra.mxu3 %v1969_v0 }
 0x7a8   :  { %1098 = vmatmul.f32.gmra.mxu3 %v1971_v43 }
 0x7b0   :  { %1101 = vmatmul.f32.gmra.mxu3 %v1973_v50 }
 0x7b8   :  { %1104 = vmatmul.f32.gmra.mxu3 %v1975_v47 }
 0x7c0   :  { %1107 = vmatmul.f32.gmra.mxu3 %v1977_v2 }
 0x7dd   :  { %v1063_v40 = vpop.f32.mrf.mxu0 }
 0x7de   :  { %1111 = vadd.xlane.f32.xlu0 %v1063_v40 }
 0x7e3   :  { %v1072_v10 = vpop.f32.mrf.mxu3 }
 0x7e5   :  { %v1066_v54 = vpop.f32.mrf.mxu0 }
 0x7e6   :  { %1117 = vadd.xlane.f32.xlu0 %v1072_v10 }
 0x7eb   :  { %v1075_v35 = vpop.f32.mrf.mxu3 }
 0x7ed   :  { %v1069_v29 = vpop.f32.mrf.mxu0 }
 0x7ee   :  { %1113 = vadd.xlane.f32.xlu0 %v1066_v54 }
 0x7f3   :  { %v1078_v38 = vpop.f32.mrf.mxu3 }
 0x7f6   :  { %1119 = vadd.xlane.f32.xlu0 %v1075_v35 }
 0x7fb   :  { %v1081_v27 = vpop.f32.mrf.mxu3 }
 0x7fe   :  { %1115 = vadd.xlane.f32.xlu0 %v1069_v29 }
 0x803   :  { %v1084_v37 = vpop.f32.mrf.mxu3 }
 0x806   :  { %1121 = vadd.xlane.f32.xlu0 %v1078_v38 }
 0x80b   :  { %v1087_v26 = vpop.f32.mrf.mxu3 }
 0x80c   :  { %1127 = vadd.xlane.f32.xlu1 %v1087_v26 }
 0x80e   :  { %1123 = vadd.xlane.f32.xlu0 %v1081_v27 }
 0x813   :  { %v1090_v44 = vpop.f32.mrf.mxu3 }
 0x816   :  { %1125 = vadd.xlane.f32.xlu0 %v1084_v37 }
 0x81b   :  { %v1093_v45 = vpop.f32.mrf.mxu3 }
 0x823   :  { %v1096_v46 = vpop.f32.mrf.mxu3 }
 0x82b   :  { %v1099_v28 = vpop.f32.mrf.mxu3 }
 0x82c   :  { %1135 = vadd.xlane.f32.xlu0 %v1099_v28 }
 0x833   :  { %v1102_v30 = vpop.f32.mrf.mxu3 }
 0x834   :  { %1137 = vadd.xlane.f32.xlu2 %v1102_v30  ;;  %1133 = vadd.xlane.f32.xlu0 %v1096_v46 }
 0x83b   :  { %v1105_v31 = vpop.f32.mrf.mxu3 }
 0x83c   :  { %1131 = vadd.xlane.f32.xlu0 %v1093_v45 }
 0x843   :  { %v1108_v19 = vpop.f32.mrf.mxu3 }
 0x844   :  { %1141 = vadd.xlane.f32.xlu1 %v1108_v19  ;;  %1129 = vadd.xlane.f32.xlu0 %v1090_v44 }
 0x84c   :  { %1139 = vadd.xlane.f32.xlu0 %v1105_v31 }
 0x851   :  { %v1112_v59 = vpop.xlane.xlu0 %1111 }
 0x852   :  { %v1143_v24 = vmul.f32 0.015625, %v1112_v59 }
 0x854   :  { %v1190_v43 = vsel %vm1189_vm4, %v1143_v24, 0.0 }
 0x859   :  { %v1118_v32 = vpop.xlane.xlu0 %1117 }
 0x85a   :  { %v1146_v2 = vmul.f32 0.015625, %v1118_v32 }
 0x85c   :  { %v1195_v53 = vsel %vm1189_vm4, %v1146_v2, 0.0 }
 0x85d   :  { %1221 = vrot.lane.b32.xlu1 %v1598_v23, %s1516_s3 }
 0x860   :  { %1219 = vrot.lane.b32.xlu0 %v1593_v18, %s1516_s3 }
 0x861   :  { %v1114_v33 = vpop.xlane.xlu0 %1113 }
 0x862   :  { %v1144_v25 = vmul.f32 0.015625, %v1114_v33 }
 0x864   :  { %v1191_v0 = vsel %vm1189_vm4, %v1144_v25, 0.0 }
 0x865   :  { %v1192_v47 = vadd.f32 %v1191_v0, %v1190_v43 }
 0x869   :  { %v1120_v34 = vpop.xlane.xlu0 %1119 }
 0x86a   :  { %v1147_v49 = vmul.f32 0.015625, %v1120_v34 }
 0x86c   :  { %v1197_v14 = vsel %vm1189_vm4, %v1147_v49, 0.0 }
 0x871   :  { %v1116_v36 = vpop.xlane.xlu0 %1115 }
 0x872   :  { %v1145_v42 = vmul.f32 0.015625, %v1116_v36 }
 0x874   :  { %v1193_v50 = vsel %vm1189_vm4, %v1145_v42, 0.0 }
 0x875   :  { %v1194_v48 = vadd.f32 %v1193_v50, %v1192_v47 }
 0x877   :  { %v1196_v60 = vadd.f32 %v1195_v53, %v1194_v48 }
 0x879   :  { %v1122_v39 = vpop.xlane.xlu0 %1121  ;;  %v1198_v1 = vadd.f32 %v1197_v14, %v1196_v60 }
 0x87a   :  { %v1148_v57 = vmul.f32 0.015625, %v1122_v39 }
 0x87c   :  { %v1199_v3 = vsel %vm1189_vm4, %v1148_v57, 0.0 }
 0x87d   :  { %v1200_v4 = vadd.f32 %v1199_v3, %v1198_v1 }
 0x87f   :  { %v1128_v17 = vpop.xlane.xlu1 %1127 }
 0x880   :  { %v1151_v13 = vmul.f32 0.015625, %v1128_v17  ;;  %v1289_v17 = vld [vmem:[%s2071_s4] sm:$0xff] }
 0x881   :  { %v1124_v51 = vpop.xlane.xlu0 %1123 }
 0x882   :  { %v1149_v62 = vmul.f32 0.015625, %v1124_v51  ;;  %v1250_v15 = vsel %vm1189_vm4, %v1151_v13, 0.0 }
 0x884   :  { %v1201_v61 = vsel %vm1189_vm4, %v1149_v62, 0.0 }
 0x885   :  { %v1202_v7 = vadd.f32 %v1201_v61, %v1200_v4 }
 0x889   :  { %v1126_v5 = vpop.xlane.xlu0 %1125 }
 0x88a   :  { %v1150_v6 = vmul.f32 0.015625, %v1126_v5 }
 0x88c   :  { %1174 = vmatpush.msrb.mxu0 %v1150_v6  ;;  %v1203_v8 = vsel %vm1189_vm4, %v1150_v6, 0.0 }
 0x88d   :  { %v1204_v55 = vadd.f32 %v1203_v8, %v1202_v7 }
 0x88e   :  { %1175 = vmatpush.msrb.mxu0 %v1149_v62 }
 0x88f   :  { %1205 = vadd.xlane.f32.xlu2 %v1204_v55 }
 0x890   :  { %1176 = vmatpush.msrb.mxu0 %v1148_v57 }
 0x892   :  { %1177 = vmatpush.msrb.mxu0 %v1147_v49 }
 0x894   :  { %1178 = vmatpush.msrb.mxu0 %v1146_v2 }
 0x896   :  { %1179 = vmatpush.msrb.mxu0 %v1145_v42 }
 0x898   :  { %1180 = vmatpush.msrb.mxu0 %v1144_v25 }
 0x89a   :  { %1181 = vmatpush.msrb.mxu0 %v1143_v24 }
 0x89b   :  { %1409 = vmatmul.msk.f32.vlgmr.msrb.gmra.mxu0 %vm1159_vm5, %v1593_v18 }
 0x89f   :  { %v1136_v52 = vpop.xlane.xlu0 %1135 }
 0x8a0   :  { %v1155_v58 = vmul.f32 0.015625, %v1136_v52 }
 0x8a2   :  { %v1257_v27 = vsel %vm1189_vm4, %v1155_v58, 0.0 }
 0x8a3   :  { %1410 = vmatmul.msk.f32.gmra.mxu0 %vm1159_vm5, %v1598_v23 }
 0x8a7   :  { %v1134_v11 = vpop.xlane.xlu0 %1133  ;;  %v1138_v18 = vpop.xlane.xlu2 %1137 }
 0x8a8   :  { %v1154_v9 = vmul.f32 0.015625, %v1134_v11  ;;  %v1156_v10 = vmul.f32 0.015625, %v1138_v18 }
 0x8aa   :  { %v1255_v35 = vsel %vm1189_vm4, %v1154_v9, 0.0  ;;  %v1259_v26 = vsel %vm1189_vm4, %v1156_v10, 0.0 }
 0x8af   :  { %v1132_v12 = vpop.xlane.xlu0 %1131 }
 0x8b0   :  { %v1153_v63 = vmul.f32 0.015625, %v1132_v12 }
 0x8b2   :  { %v1253_v23 = vsel %vm1189_vm4, %v1153_v63, 0.0 }
 0x8b7   :  { %v1142_v16 = vpop.xlane.xlu1 %1141  ;;  %v1130_v20 = vpop.xlane.xlu0 %1129 }
 0x8b8   :  { %v1158_v21 = vmul.f32 0.015625, %v1142_v16  ;;  %v1152_v22 = vmul.f32 0.015625, %v1130_v20 }
 0x8ba   :  { %v1251_v56 = vsel %vm1189_vm4, %v1152_v22, 0.0  ;;  %1235 = vmatpush.msra.mxu0 %v1158_v21  ;;  %v1263_v28 = vsel %vm1189_vm4, %v1158_v21, 0.0 }
 0x8bb   :  { %v1252_v41 = vadd.f32 %v1251_v56, %v1250_v15 }
 0x8bd   :  { %v1254_v40 = vadd.f32 %v1253_v23, %v1252_v41 }
 0x8bf   :  { %v1256_v54 = vadd.f32 %v1255_v35, %v1254_v40  ;;  %v1140_v38 = vpop.xlane.xlu0 %1139 }
 0x8c0   :  { %v1157_v29 = vmul.f32 0.015625, %v1140_v38 }
 0x8c1   :  { %v1258_v37 = vadd.f32 %v1257_v27, %v1256_v54 }
 0x8c2   :  { %1236 = vmatpush.msra.mxu0 %v1157_v29  ;;  %v1261_v45 = vsel %vm1189_vm4, %v1157_v29, 0.0 }
 0x8c3   :  { %v1260_v44 = vadd.f32 %v1259_v26, %v1258_v37 }
 0x8c4   :  { %1237 = vmatpush.msra.mxu0 %v1156_v10 }
 0x8c5   :  { %v1262_v46 = vadd.f32 %v1261_v45, %v1260_v44 }
 0x8c6   :  { %1238 = vmatpush.msra.mxu0 %v1155_v58 }
 0x8c7   :  { %v1264_v30 = vadd.f32 %v1263_v28, %v1262_v46 }
 0x8c8   :  { %1239 = vmatpush.msra.mxu0 %v1154_v9 }
 0x8c9   :  { %1265 = vadd.xlane.f32.xlu2 %v1264_v30 }
 0x8ca   :  { %1240 = vmatpush.msra.mxu0 %v1153_v63  ;;  %v1449_v63 = vld [vmem:[%s2072_s5] ss:$0 sm:$0xff] }
 0x8cc   :  { %1241 = vmatpush.msra.mxu0 %v1152_v22 }
 0x8ce   :  { %1242 = vmatpush.msra.mxu0 %v1151_v13  ;;  %v1290_v13 = vld [vmem:[%s2071_s4 + $0x8] sm:$0x3] }
 0x8cf   :  { %v1222_v19 = vpop.permute.xlu1 %1221 }
 0x8d2   :  { %v1220_v31 = vpop.permute.xlu0 %1219 }
 0x8d3   :  { %1411 = vmatmul.msk.f32.vlgmr.msra.gmra.mxu0 %vm1159_vm5, %v1220_v31 }
 0x8db   :  { %1412 = vmatmul.msk.f32.gmra.mxu0 %vm1159_vm5, %v1222_v19 }
 0x902   :  { %v1206_v59 = vpop.xlane.xlu2 %1205 }
 0x903   :  { %v1207_v32 = vrot.slane %v1206_v59, 4 }
 0x905   :  { %v1208_v33 = vadd.f32 %v1207_v32, %v1206_v59 }
 0x907   :  { %v1209_v34 = vrot.slane %v1208_v33, 2 }
 0x909   :  { %v1210_v36 = vadd.f32 %v1209_v34, %v1208_v33 }
 0x90b   :  { %v1211_v25 = vrot.slane %v1210_v36, 1 }
 0x90d   :  { %v1212_v24 = vadd.f32 %v1211_v25, %v1210_v36 }
 0x90f   :  { %1431 = vpush %v1212_v24 }
 0x918   :  { %v1183_v43 = vpop.f32.mrf.mxu0 }
 0x920   :  { %v1186_v57 = vpop.f32.mrf.mxu0 }
 0x93c   :  { %v1266_v42 = vpop.xlane.xlu2 %1265 }
 0x93d   :  { %v1267_v39 = vrot.slane %v1266_v42, 4 }
 0x93f   :  { %v1268_v0 = vadd.f32 %v1267_v39, %v1266_v42 }
 0x940   :  { %s1432_s25 = spop %1431 }
 0x941   :  { %v1269_v50 = vrot.slane %v1268_v0, 2  ;;  %v1214_v47 = vstv %s1432_s25 }
 0x942   :  { %v1215_v2 = vadd.f32 1e-12, %v1214_v47 }
 0x943   :  { %v1270_v48 = vadd.f32 %v1269_v50, %v1268_v0 }
 0x944   :  { %1484 = vrcp.f32 %v1215_v2 }
 0x945   :  { %v1271_v51 = vrot.slane %v1270_v48, 1 }
 0x947   :  { %v1272_v53 = vadd.f32 %v1271_v51, %v1270_v48 }
 0x949   :  { %1433 = vpush %v1272_v53 }
 0x94a   :  { %v1485_v49 = vpop.eup %1484 }
 0x94b   :  { %v1218_v60 = vmul.f32 %v1485_v49, %v1186_v57  ;;  %v1217_v62 = vmul.f32 %v1485_v49, %v1183_v43 }
 0x950   :  { %v1244_v14 = vpop.f32.mrf.mxu0 }
 0x958   :  { %v1247_v4 = vpop.f32.mrf.mxu0 }
 0x97a   :  { %s1434_s26 = spop %1433 }
 0x97b   :  { %v1274_v3 = vstv %s1434_s26 }
 0x97c   :  { %v1275_v1 = vadd.f32 1e-12, %v1274_v3 }
 0x97e   :  { %1486 = vrcp.f32 %v1275_v1 }
 0x984   :  { %v1487_v61 = vpop.eup %1486 }
 0x985   :  { %v1277_v5 = vmul.f32 %v1487_v61, %v1244_v14  ;;  %v1278_v6 = vmul.f32 %v1487_v61, %v1247_v4 }
 0x987   :  { %v1444_v7 = vpack.i.bf16 %v1277_v5, %v1278_v6 }
 0x989   :  { %1445 = vrot.lane.b32.xlu0 %v1444_v7, %s1517_s27 }
 0x9fb   :  { %v1446_v8 = vpop.permute.xlu0 %1445 }
 0x9fc   :  { %v1448_v55 = vunpack.i.h.bf16 %v1446_v8  ;;  %v1447_v52 = vunpack.i.l.bf16 %v1446_v8 }
 0x9fe   :  { %v1288_v11 = vsel %vm1189_vm4, %v1218_v60, %v1447_v52  ;;  %v1287_v12 = vsel %vm1189_vm4, %v1217_v62, %v1448_v55 }
 0x9ff   :  { %1311 = vmatpush.msrb.mxu0 %v1288_v11 }
 0xa01   :  { %1312 = vmatpush.msrb.mxu0 %v1287_v12 }
 0xa02   :  { %1413 = vmatmul.msk.f32.vlgmr.msrb.gmra.mxu0 %vm111_vm1, %v1289_v17 }
 0xa0a   :  { %1414 = vmatmul.msk.f32.gmra.mxu0 %vm111_vm1, %v1290_v13 }
 0xa7f   :  { %v1314_v16 = vpop.f32.mrf.mxu0 }
 0xa80   :  { %1320 = vxpose.xlu2.b32.start [1/2] (short) (narrow) %v1314_v16, 8 }
 0xa87   :  { %v1317_v20 = vpop.f32.mrf.mxu0 }
 0xa88   :  { %1321 = vxpose.xlu2.b32.end [2/2] (short) (narrow) %v1317_v20, 8 }
 0xb19   :  { %v1336_v21 = vpop.trf.xlu2 }
 0xb1a   :  { %v1356_v22 = vadd.f32 %v1449_v63, %v1336_v21 }
 0xb1c   :  { %1358 = vst.msk [vmem:[#allocation2] sm:$0x3] %vm1357_vm6, %v1356_v22 }
 0xb1d   :  { %1369 = dma.vmem_to_hbm [thread:$0]  %s1365_s11, 32, %s1367_s14, [#allocation3]  }
 0xb1e   :  { %1512 = dma.done.wait [#allocation3], 32  }
 0xb1f   :  { %1513 = vsyncadd [#allocation3], 4294967264 }
 0xb20   :  { %1374 = vsyncpa [#allocation3], 1 }

</bundles_post_ra>
